<compile_context>
chip_gen: v5e
topology: v5e:2x2
jax: 0.10.0
libtpu: 0.0.40
codegen_flags: <defaults>
</compile_context>

<pallas_src>
import math

import jax
import jax.numpy as jnp
from jax.experimental import pallas as pl
from jax.experimental.pallas import tpu as pltpu

# ---------------- model config (matches the module defaults at small scale) -------------
VOCAB = 32
EMBED = 64
HEADS = 2
FF = 128
LAYERS = 2
BATCH = 2
SEQ = 8
EPS = 1e-5

SLAB_W = 3 * EMBED                  # 192: lane width of both packed parameter slabs
VPAD = 128                          # lane-dense classifier output width (V=32 padded)
VEC_ROWS_PER_LAYER = 8              # in_b, ln1_w, ln1_b, ln2_w, ln2_b, out_b, ff1_b, ff2_b
W_ROWS_PER_LAYER = 3 * EMBED + FF   # 320 rows: qkv^T(64) | out^T(64) | ff1^T(64) | ff2^T(128)


# ------------------------------- Pallas forward ----------------------------------------
def transformer_forward_pallas(tokens, p, num_heads=HEADS):
    B, S = tokens.shape
    V, E = p["fc_w"].shape
    L = p["in_w"].shape[0]
    F = p["ff1_w"].shape[1]
    H = num_heads
    Hd = E // H
    T = S * B
    scale = 1.0 / math.sqrt(Hd)

    # ---- wrapper-side layout plumbing (static, one-time) ---------------------------
    # embedding gather + seq-major flatten: row = s*B + b  -> (T, E) f32
    x_flat = jnp.transpose(p["emb"][tokens], (1, 0, 2)).reshape(T, E).astype(jnp.float32)

    def pad_cols(m, w=SLAB_W):
        return jnp.pad(m, ((0, 0), (0, w - m.shape[1])))

    # bf16 weight slab: per layer [qkv^T (E,3E) | out^T (E,E) | ff1^T (E,F) | ff2^T (F,E)]
    wblocks = []
    for l in range(L):
        wblocks += [p["in_w"][l].T,                 # (E, 3E): output cols = [q | k | v]
                    pad_cols(p["out_w"][l].T),      # (E, E)
                    pad_cols(p["ff1_w"][l].T),      # (E, F)
                    pad_cols(p["ff2_w"][l].T)]      # (F, E)
    w_slab = jnp.concatenate(wblocks, axis=0).astype(jnp.bfloat16)      # (L*320, 192)

    # f32 slab: one row per LN/bias vector, then fc bias, then the f32 classifier weight.
    def row(v, w=SLAB_W):
        return jnp.pad(v.astype(jnp.float32), (0, w - v.shape[0]))

    frows = []
    for l in range(L):
        frows += [row(p["in_b"][l]),
                  row(p["ln1_w"][l]), row(p["ln1_b"][l]),
                  row(p["ln2_w"][l]), row(p["ln2_b"][l]),
                  row(p["out_b"][l]), row(p["ff1_b"][l]), row(p["ff2_b"][l])]
    fc_b_row = L * VEC_ROWS_PER_LAYER                                   # row 16
    frows.append(row(jnp.pad(p["fc_b"], (0, VPAD - V))))                # fc bias -> 128 lanes
    while len(frows) % 8:                                               # sublane-align fc weight
        frows.append(jnp.zeros((SLAB_W,), jnp.float32))
    fc_w_row = len(frows)                                               # row 24 (8-aligned)
    f_slab = jnp.concatenate(
        [jnp.stack(frows, axis=0),
         pad_cols(jnp.pad(p["fc_w"].T.astype(jnp.float32), ((0, 0), (0, VPAD - V))))],
        axis=0)                                                         # (24 + E, 192)

    def kernel(x_ref, w_ref, f_ref, o_ref):

        def layernorm(y, w, b):
            mu = jnp.mean(y, axis=-1, keepdims=True)
            d = y - mu
            var = jnp.mean(d * d, axis=-1, keepdims=True)
            return d * jax.lax.rsqrt(var + EPS) * w + b

        # additive same-batch mask bias (0 / -1e30): built ONCE, reused across layers/heads
        rid = jax.lax.broadcasted_iota(jnp.int32, (T, T), 0)
        cid = jax.lax.broadcasted_iota(jnp.int32, (T, T), 1)
        mask_bias = jnp.where((rid % B) == (cid % B), 0.0, -1e30).astype(jnp.float32)

        x = x_ref[...]                                                  # (T, E) f32

        for l in range(L):                        # L = 2, unrolled at trace time
            wb = l * W_ROWS_PER_LAYER
            vb = l * VEC_ROWS_PER_LAYER
            in_b  = f_ref[vb + 0:vb + 1, :]                             # (1, 3E)
            ln1_w = f_ref[vb + 1:vb + 2, :E]
            ln1_b = f_ref[vb + 2:vb + 3, :E]
            ln2_w = f_ref[vb + 3:vb + 4, :E]
            ln2_b = f_ref[vb + 4:vb + 5, :E]
            out_b = f_ref[vb + 5:vb + 6, :E]
            ff1_b = f_ref[vb + 6:vb + 7, :F]
            ff2_b = f_ref[vb + 7:vb + 8, :E]

            # ---- fused QKV projection: ONE (T,E)x(E,3E) bf16 MXU op ----
            qkv = jnp.dot(x.astype(jnp.bfloat16), w_ref[wb:wb + E, :],
                          preferred_element_type=jnp.float32) + in_b    # (T, 3E) f32

            # ---- attention over the flat token axis; head picks are lane slices ----
            ctx = []
            for h in range(H):                    # H = 2, unrolled
                q = qkv[:, h * Hd:(h + 1) * Hd]
                k = qkv[:, E + h * Hd:E + (h + 1) * Hd]
                v = qkv[:, 2 * E + h * Hd:2 * E + (h + 1) * Hd]
                s = jax.lax.dot_general(q.astype(jnp.bfloat16), k.astype(jnp.bfloat16),
                                        (((1,), (1,)), ((), ())),
                                        preferred_element_type=jnp.float32)
                s = s * scale + mask_bias
                s = s - jnp.max(s, axis=-1, keepdims=True)
                e = jnp.exp(s)
                prob = e * pl.reciprocal(jnp.sum(e, axis=-1, keepdims=True), approx=True)
                ctx.append(jnp.dot(prob.astype(jnp.bfloat16), v.astype(jnp.bfloat16),
                                   preferred_element_type=jnp.float32))  # (T, Hd)
            ctx = jnp.concatenate(ctx, axis=-1)                          # (T, E) lane concat

            # ---- fused out-projection: ONE (T,E)x(E,E) bf16 MXU op ----
            attn = jnp.dot(ctx.astype(jnp.bfloat16), w_ref[wb + E:wb + 2 * E, :E],
                           preferred_element_type=jnp.float32) + out_b
            x = layernorm(x + attn, ln1_w, ln1_b)

            # ---- feed-forward (relu), bf16 operands, f32 accumulate ----
            hid = jnp.maximum(
                jnp.dot(x.astype(jnp.bfloat16), w_ref[wb + 2 * E:wb + 3 * E, :F],
                        preferred_element_type=jnp.float32) + ff1_b, 0.0)
            ff = jnp.dot(hid.astype(jnp.bfloat16), w_ref[wb + 3 * E:wb + 3 * E + F, :E],
                         preferred_element_type=jnp.float32) + ff2_b
            x = layernorm(x + ff, ln2_w, ln2_b)

        # ---- classifier: sublane-aligned last-8-rows view, f32 matmul, lane-dense store ----
        wfc = f_ref[fc_w_row:fc_w_row + E, :VPAD]                        # (E, 128) f32
        fcb = f_ref[fc_b_row:fc_b_row + 1, :VPAD]                        # (1, 128) f32
        last8 = x[T - 8:, :]                                             # (8, E), 8-aligned
        o_ref[...] = jnp.dot(last8, wfc, preferred_element_type=jnp.float32) + fcb

    vspec = pl.BlockSpec(memory_space=pltpu.MemorySpace.VMEM)
    out8 = pl.pallas_call(
        kernel,
        out_shape=jax.ShapeDtypeStruct((8, VPAD), jnp.float32),
        in_specs=[vspec, vspec, vspec],
        out_specs=vspec,
    )(x_flat, w_slab, f_slab)

    # last position of every batch element = flat rows T-B..T-1 = last B rows of the block
    return out8[8 - B:, :V]


# ----------------------------- pure-JAX reference ---------------------------------------
def ref_forward(tokens, p, num_heads=HEADS):
    B, S = tokens.shape
    V, E = p["fc_w"].shape
    L = p["in_w"].shape[0]
    H = num_heads
    Hd = E // H

    def layernorm(y, w, b):
        mu = jnp.mean(y, axis=-1, keepdims=True)
        var = jnp.mean((y - mu) ** 2, axis=-1, keepdims=True)
        return (y - mu) * jax.lax.rsqrt(var + EPS) * w + b

    x = jnp.transpose(p["emb"][tokens], (1, 0, 2)).astype(jnp.float32)  # (S, B, E)
    for l in range(L):
        qkv = jnp.einsum("sbe,fe->sbf", x, p["in_w"][l]) + p["in_b"][l]
        q, k, v = jnp.split(qkv, 3, axis=-1)

        def split_heads(t):
            return jnp.transpose(t.reshape(S, B, H, Hd), (1, 2, 0, 3))

        q, k, v = split_heads(q), split_heads(k), split_heads(v)
        s = jnp.einsum("bhsd,bhtd->bhst", q, k) / math.sqrt(Hd)
        a = jax.nn.softmax(s, axis=-1)
        o = jnp.einsum("bhst,bhtd->bhsd", a, v)
        o = jnp.transpose(o, (2, 0, 1, 3)).reshape(S, B, E)
        o = jnp.einsum("sbe,fe->sbf", o, p["out_w"][l]) + p["out_b"][l]
        x = layernorm(x + o, p["ln1_w"][l], p["ln1_b"][l])
        h = jax.nn.relu(jnp.einsum("sbe,fe->sbf", x, p["ff1_w"][l]) + p["ff1_b"][l])
        f = jnp.einsum("sbf,ef->sbe", h, p["ff2_w"][l]) + p["ff2_b"][l]
        x = layernorm(x + f, p["ln2_w"][l], p["ln2_b"][l])
    return x[-1] @ p["fc_w"].T + p["fc_b"]


# --------------------------------- param init -------------------------------------------
def init_params(key):
    ks = jax.random.split(key, 16)

    def nrm(k, shape, s=0.1):
        return (s * jax.random.normal(k, shape)).astype(jnp.float32)

    L, E, F, V = LAYERS, EMBED, FF, VOCAB
    return {
        "emb":   nrm(ks[0], (V, E)),
        "in_w":  nrm(ks[1], (L, 3 * E, E)),
        "in_b":  nrm(ks[2], (L, 3 * E), 0.02),
        "out_w": nrm(ks[3], (L, E, E)),
        "out_b": nrm(ks[4], (L, E), 0.02),
        "ln1_w": 1.0 + nrm(ks[5], (L, E), 0.05),
        "ln1_b": nrm(ks[6], (L, E), 0.05),
        "ln2_w": 1.0 + nrm(ks[7], (L, E), 0.05),
        "ln2_b": nrm(ks[8], (L, E), 0.05),
        "ff1_w": nrm(ks[9], (L, F, E)),
        "ff1_b": nrm(ks[10], (L, F), 0.02),
        "ff2_w": nrm(ks[11], (L, E, F)),
        "ff2_b": nrm(ks[12], (L, E), 0.02),
        "fc_w":  nrm(ks[13], (V, E)),
        "fc_b":  nrm(ks[14], (V,), 0.02),
    }


if __name__ == "__main__":
    key = jax.random.PRNGKey(0)
    pkey, tkey = jax.random.split(key)
    params = init_params(pkey)
    tokens = jax.random.randint(tkey, (BATCH, SEQ), 0, VOCAB, dtype=jnp.int32)

    out = jax.block_until_ready(transformer_forward_pallas(tokens, params))
    ref = jax.block_until_ready(ref_forward(tokens, params))

    assert out.shape == (BATCH, VOCAB), out.shape
    # Tolerance reflects bf16 MXU operands (per perf review) + approx reciprocal in the
    # softmax; logits are O(1), observed error is ~1e-2, so 5e-2 is a comfortable bound
    # while still catching any real semantic bug.
    assert jnp.allclose(out, ref, atol=5e-2, rtol=5e-2), (
        f"max abs diff {jnp.max(jnp.abs(out - ref))}")
    print("KERNEL_OK")
</pallas_src>

<mosaic_0001>
module attributes {stable_mosaic.version = 11 : i64} {
  func.func @kernel(%arg0: memref<16x64xf32, #tpu.memory_space<vmem>>, %arg1: memref<640x192xbf16, #tpu.memory_space<vmem>>, %arg2: memref<88x192xf32, #tpu.memory_space<vmem>>, %arg3: memref<8x128xf32, #tpu.memory_space<vmem>>) attributes {dimension_semantics = [], scalar_prefetch = 0 : i64, scratch_operands = 0 : i64, tpu.core_type = #tpu.core_type<tc>} {
    %0 = tpu.iota {dimensions = array<i32: 0>} : vector<16x16xi32>
    %1 = tpu.iota {dimensions = array<i32: 1>} : vector<16x16xi32>
    %c2_i32 = arith.constant 2 : i32
    %c0_i32 = arith.constant 0 : i32
    %2 = arith.cmpi eq, %c2_i32, %c0_i32 : i32
    %c1_i32 = arith.constant 1 : i32
    %3 = arith.select %2, %c1_i32, %c2_i32 : i32
    %4 = vector.broadcast %3 : i32 to vector<16x16xi32>
    %5 = arith.remsi %0, %4 : vector<16x16xi32>
    %c0_i32_0 = arith.constant 0 : i32
    %6 = vector.broadcast %c0_i32_0 : i32 to vector<16x16xi32>
    %7 = arith.cmpi ne, %5, %6 : vector<16x16xi32>
    %c0_i32_1 = arith.constant 0 : i32
    %8 = vector.broadcast %c0_i32_1 : i32 to vector<16x16xi32>
    %9 = arith.cmpi slt, %5, %8 : vector<16x16xi32>
    %c0_i32_2 = arith.constant 0 : i32
    %10 = arith.cmpi slt, %3, %c0_i32_2 : i32
    %11 = vector.broadcast %10 : i1 to vector<16x16xi1>
    %12 = vector.broadcast %11 : vector<16x16xi1> to vector<16x16xi1>
    %13 = arith.xori %9, %12 : vector<16x16xi1>
    %14 = arith.andi %13, %7 : vector<16x16xi1>
    %15 = vector.broadcast %3 : i32 to vector<16x16xi32>
    %16 = arith.addi %5, %15 : vector<16x16xi32>
    %17 = arith.select %14, %16, %5 : vector<16x16xi1>, vector<16x16xi32>
    %c2_i32_3 = arith.constant 2 : i32
    %c0_i32_4 = arith.constant 0 : i32
    %18 = arith.cmpi eq, %c2_i32_3, %c0_i32_4 : i32
    %c1_i32_5 = arith.constant 1 : i32
    %19 = arith.select %18, %c1_i32_5, %c2_i32_3 : i32
    %20 = vector.broadcast %19 : i32 to vector<16x16xi32>
    %21 = arith.remsi %1, %20 : vector<16x16xi32>
    %c0_i32_6 = arith.constant 0 : i32
    %22 = vector.broadcast %c0_i32_6 : i32 to vector<16x16xi32>
    %23 = arith.cmpi ne, %21, %22 : vector<16x16xi32>
    %c0_i32_7 = arith.constant 0 : i32
    %24 = vector.broadcast %c0_i32_7 : i32 to vector<16x16xi32>
    %25 = arith.cmpi slt, %21, %24 : vector<16x16xi32>
    %c0_i32_8 = arith.constant 0 : i32
    %26 = arith.cmpi slt, %19, %c0_i32_8 : i32
    %27 = vector.broadcast %26 : i1 to vector<16x16xi1>
    %28 = vector.broadcast %27 : vector<16x16xi1> to vector<16x16xi1>
    %29 = arith.xori %25, %28 : vector<16x16xi1>
    %30 = arith.andi %29, %23 : vector<16x16xi1>
    %31 = vector.broadcast %19 : i32 to vector<16x16xi32>
    %32 = arith.addi %21, %31 : vector<16x16xi32>
    %33 = arith.select %30, %32, %21 : vector<16x16xi1>, vector<16x16xi32>
    %34 = arith.cmpi eq, %17, %33 : vector<16x16xi32>
    %cst = arith.constant 0.000000e+00 : f32
    %cst_9 = arith.constant -1.000000e+30 : f32
    %35 = vector.broadcast %cst : f32 to vector<16x16xf32>
    %36 = vector.broadcast %cst_9 : f32 to vector<16x16xf32>
    %37 = arith.select %34, %35, %36 : vector<16x16xi1>, vector<16x16xf32>
    %c0 = arith.constant 0 : index
    %c0_10 = arith.constant 0 : index
    %38 = vector.load %arg0[%c0, %c0_10] : memref<16x64xf32, #tpu.memory_space<vmem>>, vector<16x64xf32>
    %c0_11 = arith.constant 0 : index
    %c0_12 = arith.constant 0 : index
    %39 = vector.load %arg2[%c0_11, %c0_12] : memref<88x192xf32, #tpu.memory_space<vmem>>, vector<1x192xf32>
    %c1 = arith.constant 1 : index
    %c0_13 = arith.constant 0 : index
    %40 = vector.load %arg2[%c1, %c0_13] : memref<88x192xf32, #tpu.memory_space<vmem>>, vector<1x64xf32>
    %c2 = arith.constant 2 : index
    %c0_14 = arith.constant 0 : index
    %41 = vector.load %arg2[%c2, %c0_14] : memref<88x192xf32, #tpu.memory_space<vmem>>, vector<1x64xf32>
    %c3 = arith.constant 3 : index
    %c0_15 = arith.constant 0 : index
    %42 = vector.load %arg2[%c3, %c0_15] : memref<88x192xf32, #tpu.memory_space<vmem>>, vector<1x64xf32>
    %c4 = arith.constant 4 : index
    %c0_16 = arith.constant 0 : index
    %43 = vector.load %arg2[%c4, %c0_16] : memref<88x192xf32, #tpu.memory_space<vmem>>, vector<1x64xf32>
    %c5 = arith.constant 5 : index
    %c0_17 = arith.constant 0 : index
    %44 = vector.load %arg2[%c5, %c0_17] : memref<88x192xf32, #tpu.memory_space<vmem>>, vector<1x64xf32>
    %c6 = arith.constant 6 : index
    %c0_18 = arith.constant 0 : index
    %45 = vector.load %arg2[%c6, %c0_18] : memref<88x192xf32, #tpu.memory_space<vmem>>, vector<1x128xf32>
    %c7 = arith.constant 7 : index
    %c0_19 = arith.constant 0 : index
    %46 = vector.load %arg2[%c7, %c0_19] : memref<88x192xf32, #tpu.memory_space<vmem>>, vector<1x64xf32>
    %47 = arith.truncf %38 : vector<16x64xf32> to vector<16x64xbf16>
    %c0_20 = arith.constant 0 : index
    %c0_21 = arith.constant 0 : index
    %48 = vector.load %arg1[%c0_20, %c0_21] : memref<640x192xbf16, #tpu.memory_space<vmem>>, vector<64x192xbf16>
    %cst_22 = arith.constant dense<0.000000e+00> : vector<16x192xf32>
    %49 = tpu.matmul %47, %48, %cst_22 {dimension_numbers = #tpu.dot_dimension_numbers<[1], [0], [0], [1], [0, 0, 1, 1], [], []>} : vector<16x64xbf16>, vector<64x192xbf16>, vector<16x192xf32> -> vector<16x192xf32>
    %50 = vector.broadcast %39 : vector<1x192xf32> to vector<16x192xf32>
    %51 = arith.addf %49, %50 : vector<16x192xf32>
    %52 = vector.extract_strided_slice %51 {offsets = [0, 0], sizes = [16, 32], strides = [1, 1]} : vector<16x192xf32> to vector<16x32xf32>
    %53 = vector.extract_strided_slice %51 {offsets = [0, 64], sizes = [16, 32], strides = [1, 1]} : vector<16x192xf32> to vector<16x32xf32>
    %54 = vector.extract_strided_slice %51 {offsets = [0, 128], sizes = [16, 32], strides = [1, 1]} : vector<16x192xf32> to vector<16x32xf32>
    %55 = arith.truncf %52 : vector<16x32xf32> to vector<16x32xbf16>
    %56 = arith.truncf %53 : vector<16x32xf32> to vector<16x32xbf16>
    %cst_23 = arith.constant dense<0.000000e+00> : vector<16x16xf32>
    %57 = tpu.matmul %55, %56, %cst_23 {dimension_numbers = #tpu.dot_dimension_numbers<[1], [1], [0], [0], [0, 0, 1, 0], [], []>} : vector<16x32xbf16>, vector<16x32xbf16>, vector<16x16xf32> -> vector<16x16xf32>
    %cst_24 = arith.constant 0.176776692 : f32
    %58 = vector.broadcast %cst_24 : f32 to vector<16x16xf32>
    %59 = arith.mulf %57, %58 : vector<16x16xf32>
    %60 = arith.addf %59, %37 : vector<16x16xf32>
    %cst_25 = arith.constant dense<0xFF800000> : vector<16xf32>
    %61 = vector.multi_reduction <maximumf>, %60, %cst_25 [1] : vector<16x16xf32> to vector<16xf32>
    %62 = vector.shape_cast %61 : vector<16xf32> to vector<16x1xf32>
    %63 = vector.broadcast %62 : vector<16x1xf32> to vector<16x16xf32>
    %64 = arith.subf %60, %63 : vector<16x16xf32>
    %65 = math.exp %64 : vector<16x16xf32>
    %cst_26 = arith.constant dense<0.000000e+00> : vector<16xf32>
    %66 = vector.multi_reduction <add>, %65, %cst_26 [1] : vector<16x16xf32> to vector<16xf32>
    %67 = vector.shape_cast %66 : vector<16xf32> to vector<16x1xf32>
    %68 = tpu.reciprocal %67 {approx = true} : vector<16x1xf32> -> vector<16x1xf32>
    %69 = vector.broadcast %68 : vector<16x1xf32> to vector<16x16xf32>
    %70 = arith.mulf %65, %69 : vector<16x16xf32>
    %71 = arith.truncf %70 : vector<16x16xf32> to vector<16x16xbf16>
    %72 = arith.truncf %54 : vector<16x32xf32> to vector<16x32xbf16>
    %cst_27 = arith.constant dense<0.000000e+00> : vector<16x32xf32>
    %73 = tpu.matmul %71, %72, %cst_27 {dimension_numbers = #tpu.dot_dimension_numbers<[1], [0], [0], [1], [0, 0, 1, 1], [], []>} : vector<16x16xbf16>, vector<16x32xbf16>, vector<16x32xf32> -> vector<16x32xf32>
    %74 = vector.extract_strided_slice %51 {offsets = [0, 32], sizes = [16, 32], strides = [1, 1]} : vector<16x192xf32> to vector<16x32xf32>
    %75 = vector.extract_strided_slice %51 {offsets = [0, 96], sizes = [16, 32], strides = [1, 1]} : vector<16x192xf32> to vector<16x32xf32>
    %76 = vector.extract_strided_slice %51 {offsets = [0, 160], sizes = [16, 32], strides = [1, 1]} : vector<16x192xf32> to vector<16x32xf32>
    %77 = arith.truncf %74 : vector<16x32xf32> to vector<16x32xbf16>
    %78 = arith.truncf %75 : vector<16x32xf32> to vector<16x32xbf16>
    %cst_28 = arith.constant dense<0.000000e+00> : vector<16x16xf32>
    %79 = tpu.matmul %77, %78, %cst_28 {dimension_numbers = #tpu.dot_dimension_numbers<[1], [1], [0], [0], [0, 0, 1, 0], [], []>} : vector<16x32xbf16>, vector<16x32xbf16>, vector<16x16xf32> -> vector<16x16xf32>
    %cst_29 = arith.constant 0.176776692 : f32
    %80 = vector.broadcast %cst_29 : f32 to vector<16x16xf32>
    %81 = arith.mulf %79, %80 : vector<16x16xf32>
    %82 = arith.addf %81, %37 : vector<16x16xf32>
    %cst_30 = arith.constant dense<0xFF800000> : vector<16xf32>
    %83 = vector.multi_reduction <maximumf>, %82, %cst_30 [1] : vector<16x16xf32> to vector<16xf32>
    %84 = vector.shape_cast %83 : vector<16xf32> to vector<16x1xf32>
    %85 = vector.broadcast %84 : vector<16x1xf32> to vector<16x16xf32>
    %86 = arith.subf %82, %85 : vector<16x16xf32>
    %87 = math.exp %86 : vector<16x16xf32>
    %cst_31 = arith.constant dense<0.000000e+00> : vector<16xf32>
    %88 = vector.multi_reduction <add>, %87, %cst_31 [1] : vector<16x16xf32> to vector<16xf32>
    %89 = vector.shape_cast %88 : vector<16xf32> to vector<16x1xf32>
    %90 = tpu.reciprocal %89 {approx = true} : vector<16x1xf32> -> vector<16x1xf32>
    %91 = vector.broadcast %90 : vector<16x1xf32> to vector<16x16xf32>
    %92 = arith.mulf %87, %91 : vector<16x16xf32>
    %93 = arith.truncf %92 : vector<16x16xf32> to vector<16x16xbf16>
    %94 = arith.truncf %76 : vector<16x32xf32> to vector<16x32xbf16>
    %cst_32 = arith.constant dense<0.000000e+00> : vector<16x32xf32>
    %95 = tpu.matmul %93, %94, %cst_32 {dimension_numbers = #tpu.dot_dimension_numbers<[1], [0], [0], [1], [0, 0, 1, 1], [], []>} : vector<16x16xbf16>, vector<16x32xbf16>, vector<16x32xf32> -> vector<16x32xf32>
    %96 = tpu.concatenate %73, %95 in 1 : vector<16x32xf32>, vector<16x32xf32> -> vector<16x64xf32>
    %97 = arith.truncf %96 : vector<16x64xf32> to vector<16x64xbf16>
    %c64 = arith.constant 64 : index
    %c0_33 = arith.constant 0 : index
    %98 = vector.load %arg1[%c64, %c0_33] : memref<640x192xbf16, #tpu.memory_space<vmem>>, vector<64x64xbf16>
    %cst_34 = arith.constant dense<0.000000e+00> : vector<16x64xf32>
    %99 = tpu.matmul %97, %98, %cst_34 {dimension_numbers = #tpu.dot_dimension_numbers<[1], [0], [0], [1], [0, 0, 1, 1], [], []>} : vector<16x64xbf16>, vector<64x64xbf16>, vector<16x64xf32> -> vector<16x64xf32>
    %100 = vector.broadcast %44 : vector<1x64xf32> to vector<16x64xf32>
    %101 = arith.addf %99, %100 : vector<16x64xf32>
    %102 = arith.addf %38, %101 : vector<16x64xf32>
    %cst_35 = arith.constant dense<0.000000e+00> : vector<16xf32>
    %103 = vector.multi_reduction <add>, %102, %cst_35 [1] : vector<16x64xf32> to vector<16xf32>
    %104 = vector.shape_cast %103 : vector<16xf32> to vector<16x1xf32>
    %cst_36 = arith.constant 6.400000e+01 : f32
    %105 = vector.broadcast %cst_36 : f32 to vector<16x1xf32>
    %106 = arith.divf %104, %105 : vector<16x1xf32>
    %107 = vector.broadcast %106 : vector<16x1xf32> to vector<16x64xf32>
    %108 = arith.subf %102, %107 : vector<16x64xf32>
    %109 = arith.mulf %108, %108 : vector<16x64xf32>
    %cst_37 = arith.constant dense<0.000000e+00> : vector<16xf32>
    %110 = vector.multi_reduction <add>, %109, %cst_37 [1] : vector<16x64xf32> to vector<16xf32>
    %111 = vector.shape_cast %110 : vector<16xf32> to vector<16x1xf32>
    %cst_38 = arith.constant 6.400000e+01 : f32
    %112 = vector.broadcast %cst_38 : f32 to vector<16x1xf32>
    %113 = arith.divf %111, %112 : vector<16x1xf32>
    %cst_39 = arith.constant 9.99999974E-6 : f32
    %114 = vector.broadcast %cst_39 : f32 to vector<16x1xf32>
    %115 = arith.addf %113, %114 : vector<16x1xf32>
    %116 = math.rsqrt %115 : vector<16x1xf32>
    %117 = vector.broadcast %116 : vector<16x1xf32> to vector<16x64xf32>
    %118 = arith.mulf %108, %117 : vector<16x64xf32>
    %119 = vector.broadcast %40 : vector<1x64xf32> to vector<16x64xf32>
    %120 = arith.mulf %118, %119 : vector<16x64xf32>
    %121 = vector.broadcast %41 : vector<1x64xf32> to vector<16x64xf32>
    %122 = arith.addf %120, %121 : vector<16x64xf32>
    %123 = arith.truncf %122 : vector<16x64xf32> to vector<16x64xbf16>
    %c128 = arith.constant 128 : index
    %c0_40 = arith.constant 0 : index
    %124 = vector.load %arg1[%c128, %c0_40] : memref<640x192xbf16, #tpu.memory_space<vmem>>, vector<64x128xbf16>
    %cst_41 = arith.constant dense<0.000000e+00> : vector<16x128xf32>
    %125 = tpu.matmul %123, %124, %cst_41 {dimension_numbers = #tpu.dot_dimension_numbers<[1], [0], [0], [1], [0, 0, 1, 1], [], []>} : vector<16x64xbf16>, vector<64x128xbf16>, vector<16x128xf32> -> vector<16x128xf32>
    %126 = vector.broadcast %45 : vector<1x128xf32> to vector<16x128xf32>
    %127 = arith.addf %125, %126 : vector<16x128xf32>
    %cst_42 = arith.constant 0.000000e+00 : f32
    %128 = vector.broadcast %cst_42 : f32 to vector<16x128xf32>
    %129 = arith.maximumf %127, %128 : vector<16x128xf32>
    %130 = arith.truncf %129 : vector<16x128xf32> to vector<16x128xbf16>
    %c192 = arith.constant 192 : index
    %c0_43 = arith.constant 0 : index
    %131 = vector.load %arg1[%c192, %c0_43] : memref<640x192xbf16, #tpu.memory_space<vmem>>, vector<128x64xbf16>
    %cst_44 = arith.constant dense<0.000000e+00> : vector<16x64xf32>
    %132 = tpu.matmul %130, %131, %cst_44 {dimension_numbers = #tpu.dot_dimension_numbers<[1], [0], [0], [1], [0, 0, 1, 1], [], []>} : vector<16x128xbf16>, vector<128x64xbf16>, vector<16x64xf32> -> vector<16x64xf32>
    %133 = vector.broadcast %46 : vector<1x64xf32> to vector<16x64xf32>
    %134 = arith.addf %132, %133 : vector<16x64xf32>
    %135 = arith.addf %122, %134 : vector<16x64xf32>
    %cst_45 = arith.constant dense<0.000000e+00> : vector<16xf32>
    %136 = vector.multi_reduction <add>, %135, %cst_45 [1] : vector<16x64xf32> to vector<16xf32>
    %137 = vector.shape_cast %136 : vector<16xf32> to vector<16x1xf32>
    %cst_46 = arith.constant 6.400000e+01 : f32
    %138 = vector.broadcast %cst_46 : f32 to vector<16x1xf32>
    %139 = arith.divf %137, %138 : vector<16x1xf32>
    %140 = vector.broadcast %139 : vector<16x1xf32> to vector<16x64xf32>
    %141 = arith.subf %135, %140 : vector<16x64xf32>
    %142 = arith.mulf %141, %141 : vector<16x64xf32>
    %cst_47 = arith.constant dense<0.000000e+00> : vector<16xf32>
    %143 = vector.multi_reduction <add>, %142, %cst_47 [1] : vector<16x64xf32> to vector<16xf32>
    %144 = vector.shape_cast %143 : vector<16xf32> to vector<16x1xf32>
    %cst_48 = arith.constant 6.400000e+01 : f32
    %145 = vector.broadcast %cst_48 : f32 to vector<16x1xf32>
    %146 = arith.divf %144, %145 : vector<16x1xf32>
    %cst_49 = arith.constant 9.99999974E-6 : f32
    %147 = vector.broadcast %cst_49 : f32 to vector<16x1xf32>
    %148 = arith.addf %146, %147 : vector<16x1xf32>
    %149 = math.rsqrt %148 : vector<16x1xf32>
    %150 = vector.broadcast %149 : vector<16x1xf32> to vector<16x64xf32>
    %151 = arith.mulf %141, %150 : vector<16x64xf32>
    %152 = vector.broadcast %42 : vector<1x64xf32> to vector<16x64xf32>
    %153 = arith.mulf %151, %152 : vector<16x64xf32>
    %154 = vector.broadcast %43 : vector<1x64xf32> to vector<16x64xf32>
    %155 = arith.addf %153, %154 : vector<16x64xf32>
    %c8 = arith.constant 8 : index
    %c0_50 = arith.constant 0 : index
    %156 = vector.load %arg2[%c8, %c0_50] : memref<88x192xf32, #tpu.memory_space<vmem>>, vector<1x192xf32>
    %c9 = arith.constant 9 : index
    %c0_51 = arith.constant 0 : index
    %157 = vector.load %arg2[%c9, %c0_51] : memref<88x192xf32, #tpu.memory_space<vmem>>, vector<1x64xf32>
    %c10 = arith.constant 10 : index
    %c0_52 = arith.constant 0 : index
    %158 = vector.load %arg2[%c10, %c0_52] : memref<88x192xf32, #tpu.memory_space<vmem>>, vector<1x64xf32>
    %c11 = arith.constant 11 : index
    %c0_53 = arith.constant 0 : index
    %159 = vector.load %arg2[%c11, %c0_53] : memref<88x192xf32, #tpu.memory_space<vmem>>, vector<1x64xf32>
    %c12 = arith.constant 12 : index
    %c0_54 = arith.constant 0 : index
    %160 = vector.load %arg2[%c12, %c0_54] : memref<88x192xf32, #tpu.memory_space<vmem>>, vector<1x64xf32>
    %c13 = arith.constant 13 : index
    %c0_55 = arith.constant 0 : index
    %161 = vector.load %arg2[%c13, %c0_55] : memref<88x192xf32, #tpu.memory_space<vmem>>, vector<1x64xf32>
    %c14 = arith.constant 14 : index
    %c0_56 = arith.constant 0 : index
    %162 = vector.load %arg2[%c14, %c0_56] : memref<88x192xf32, #tpu.memory_space<vmem>>, vector<1x128xf32>
    %c15 = arith.constant 15 : index
    %c0_57 = arith.constant 0 : index
    %163 = vector.load %arg2[%c15, %c0_57] : memref<88x192xf32, #tpu.memory_space<vmem>>, vector<1x64xf32>
    %164 = arith.truncf %155 : vector<16x64xf32> to vector<16x64xbf16>
    %c320 = arith.constant 320 : index
    %c0_58 = arith.constant 0 : index
    %165 = vector.load %arg1[%c320, %c0_58] : memref<640x192xbf16, #tpu.memory_space<vmem>>, vector<64x192xbf16>
    %cst_59 = arith.constant dense<0.000000e+00> : vector<16x192xf32>
    %166 = tpu.matmul %164, %165, %cst_59 {dimension_numbers = #tpu.dot_dimension_numbers<[1], [0], [0], [1], [0, 0, 1, 1], [], []>} : vector<16x64xbf16>, vector<64x192xbf16>, vector<16x192xf32> -> vector<16x192xf32>
    %167 = vector.broadcast %156 : vector<1x192xf32> to vector<16x192xf32>
    %168 = arith.addf %166, %167 : vector<16x192xf32>
    %169 = vector.extract_strided_slice %168 {offsets = [0, 0], sizes = [16, 32], strides = [1, 1]} : vector<16x192xf32> to vector<16x32xf32>
    %170 = vector.extract_strided_slice %168 {offsets = [0, 64], sizes = [16, 32], strides = [1, 1]} : vector<16x192xf32> to vector<16x32xf32>
    %171 = vector.extract_strided_slice %168 {offsets = [0, 128], sizes = [16, 32], strides = [1, 1]} : vector<16x192xf32> to vector<16x32xf32>
    %172 = arith.truncf %169 : vector<16x32xf32> to vector<16x32xbf16>
    %173 = arith.truncf %170 : vector<16x32xf32> to vector<16x32xbf16>
    %cst_60 = arith.constant dense<0.000000e+00> : vector<16x16xf32>
    %174 = tpu.matmul %172, %173, %cst_60 {dimension_numbers = #tpu.dot_dimension_numbers<[1], [1], [0], [0], [0, 0, 1, 0], [], []>} : vector<16x32xbf16>, vector<16x32xbf16>, vector<16x16xf32> -> vector<16x16xf32>
    %cst_61 = arith.constant 0.176776692 : f32
    %175 = vector.broadcast %cst_61 : f32 to vector<16x16xf32>
    %176 = arith.mulf %174, %175 : vector<16x16xf32>
    %177 = arith.addf %176, %37 : vector<16x16xf32>
    %cst_62 = arith.constant dense<0xFF800000> : vector<16xf32>
    %178 = vector.multi_reduction <maximumf>, %177, %cst_62 [1] : vector<16x16xf32> to vector<16xf32>
    %179 = vector.shape_cast %178 : vector<16xf32> to vector<16x1xf32>
    %180 = vector.broadcast %179 : vector<16x1xf32> to vector<16x16xf32>
    %181 = arith.subf %177, %180 : vector<16x16xf32>
    %182 = math.exp %181 : vector<16x16xf32>
    %cst_63 = arith.constant dense<0.000000e+00> : vector<16xf32>
    %183 = vector.multi_reduction <add>, %182, %cst_63 [1] : vector<16x16xf32> to vector<16xf32>
    %184 = vector.shape_cast %183 : vector<16xf32> to vector<16x1xf32>
    %185 = tpu.reciprocal %184 {approx = true} : vector<16x1xf32> -> vector<16x1xf32>
    %186 = vector.broadcast %185 : vector<16x1xf32> to vector<16x16xf32>
    %187 = arith.mulf %182, %186 : vector<16x16xf32>
    %188 = arith.truncf %187 : vector<16x16xf32> to vector<16x16xbf16>
    %189 = arith.truncf %171 : vector<16x32xf32> to vector<16x32xbf16>
    %cst_64 = arith.constant dense<0.000000e+00> : vector<16x32xf32>
    %190 = tpu.matmul %188, %189, %cst_64 {dimension_numbers = #tpu.dot_dimension_numbers<[1], [0], [0], [1], [0, 0, 1, 1], [], []>} : vector<16x16xbf16>, vector<16x32xbf16>, vector<16x32xf32> -> vector<16x32xf32>
    %191 = vector.extract_strided_slice %168 {offsets = [0, 32], sizes = [16, 32], strides = [1, 1]} : vector<16x192xf32> to vector<16x32xf32>
    %192 = vector.extract_strided_slice %168 {offsets = [0, 96], sizes = [16, 32], strides = [1, 1]} : vector<16x192xf32> to vector<16x32xf32>
    %193 = vector.extract_strided_slice %168 {offsets = [0, 160], sizes = [16, 32], strides = [1, 1]} : vector<16x192xf32> to vector<16x32xf32>
    %194 = arith.truncf %191 : vector<16x32xf32> to vector<16x32xbf16>
    %195 = arith.truncf %192 : vector<16x32xf32> to vector<16x32xbf16>
    %cst_65 = arith.constant dense<0.000000e+00> : vector<16x16xf32>
    %196 = tpu.matmul %194, %195, %cst_65 {dimension_numbers = #tpu.dot_dimension_numbers<[1], [1], [0], [0], [0, 0, 1, 0], [], []>} : vector<16x32xbf16>, vector<16x32xbf16>, vector<16x16xf32> -> vector<16x16xf32>
    %cst_66 = arith.constant 0.176776692 : f32
    %197 = vector.broadcast %cst_66 : f32 to vector<16x16xf32>
    %198 = arith.mulf %196, %197 : vector<16x16xf32>
    %199 = arith.addf %198, %37 : vector<16x16xf32>
    %cst_67 = arith.constant dense<0xFF800000> : vector<16xf32>
    %200 = vector.multi_reduction <maximumf>, %199, %cst_67 [1] : vector<16x16xf32> to vector<16xf32>
    %201 = vector.shape_cast %200 : vector<16xf32> to vector<16x1xf32>
    %202 = vector.broadcast %201 : vector<16x1xf32> to vector<16x16xf32>
    %203 = arith.subf %199, %202 : vector<16x16xf32>
    %204 = math.exp %203 : vector<16x16xf32>
    %cst_68 = arith.constant dense<0.000000e+00> : vector<16xf32>
    %205 = vector.multi_reduction <add>, %204, %cst_68 [1] : vector<16x16xf32> to vector<16xf32>
    %206 = vector.shape_cast %205 : vector<16xf32> to vector<16x1xf32>
    %207 = tpu.reciprocal %206 {approx = true} : vector<16x1xf32> -> vector<16x1xf32>
    %208 = vector.broadcast %207 : vector<16x1xf32> to vector<16x16xf32>
    %209 = arith.mulf %204, %208 : vector<16x16xf32>
    %210 = arith.truncf %209 : vector<16x16xf32> to vector<16x16xbf16>
    %211 = arith.truncf %193 : vector<16x32xf32> to vector<16x32xbf16>
    %cst_69 = arith.constant dense<0.000000e+00> : vector<16x32xf32>
    %212 = tpu.matmul %210, %211, %cst_69 {dimension_numbers = #tpu.dot_dimension_numbers<[1], [0], [0], [1], [0, 0, 1, 1], [], []>} : vector<16x16xbf16>, vector<16x32xbf16>, vector<16x32xf32> -> vector<16x32xf32>
    %213 = tpu.concatenate %190, %212 in 1 : vector<16x32xf32>, vector<16x32xf32> -> vector<16x64xf32>
    %214 = arith.truncf %213 : vector<16x64xf32> to vector<16x64xbf16>
    %c384 = arith.constant 384 : index
    %c0_70 = arith.constant 0 : index
    %215 = vector.load %arg1[%c384, %c0_70] : memref<640x192xbf16, #tpu.memory_space<vmem>>, vector<64x64xbf16>
    %cst_71 = arith.constant dense<0.000000e+00> : vector<16x64xf32>
    %216 = tpu.matmul %214, %215, %cst_71 {dimension_numbers = #tpu.dot_dimension_numbers<[1], [0], [0], [1], [0, 0, 1, 1], [], []>} : vector<16x64xbf16>, vector<64x64xbf16>, vector<16x64xf32> -> vector<16x64xf32>
    %217 = vector.broadcast %161 : vector<1x64xf32> to vector<16x64xf32>
    %218 = arith.addf %216, %217 : vector<16x64xf32>
    %219 = arith.addf %155, %218 : vector<16x64xf32>
    %cst_72 = arith.constant dense<0.000000e+00> : vector<16xf32>
    %220 = vector.multi_reduction <add>, %219, %cst_72 [1] : vector<16x64xf32> to vector<16xf32>
    %221 = vector.shape_cast %220 : vector<16xf32> to vector<16x1xf32>
    %cst_73 = arith.constant 6.400000e+01 : f32
    %222 = vector.broadcast %cst_73 : f32 to vector<16x1xf32>
    %223 = arith.divf %221, %222 : vector<16x1xf32>
    %224 = vector.broadcast %223 : vector<16x1xf32> to vector<16x64xf32>
    %225 = arith.subf %219, %224 : vector<16x64xf32>
    %226 = arith.mulf %225, %225 : vector<16x64xf32>
    %cst_74 = arith.constant dense<0.000000e+00> : vector<16xf32>
    %227 = vector.multi_reduction <add>, %226, %cst_74 [1] : vector<16x64xf32> to vector<16xf32>
    %228 = vector.shape_cast %227 : vector<16xf32> to vector<16x1xf32>
    %cst_75 = arith.constant 6.400000e+01 : f32
    %229 = vector.broadcast %cst_75 : f32 to vector<16x1xf32>
    %230 = arith.divf %228, %229 : vector<16x1xf32>
    %cst_76 = arith.constant 9.99999974E-6 : f32
    %231 = vector.broadcast %cst_76 : f32 to vector<16x1xf32>
    %232 = arith.addf %230, %231 : vector<16x1xf32>
    %233 = math.rsqrt %232 : vector<16x1xf32>
    %234 = vector.broadcast %233 : vector<16x1xf32> to vector<16x64xf32>
    %235 = arith.mulf %225, %234 : vector<16x64xf32>
    %236 = vector.broadcast %157 : vector<1x64xf32> to vector<16x64xf32>
    %237 = arith.mulf %235, %236 : vector<16x64xf32>
    %238 = vector.broadcast %158 : vector<1x64xf32> to vector<16x64xf32>
    %239 = arith.addf %237, %238 : vector<16x64xf32>
    %240 = arith.truncf %239 : vector<16x64xf32> to vector<16x64xbf16>
    %c448 = arith.constant 448 : index
    %c0_77 = arith.constant 0 : index
    %241 = vector.load %arg1[%c448, %c0_77] : memref<640x192xbf16, #tpu.memory_space<vmem>>, vector<64x128xbf16>
    %cst_78 = arith.constant dense<0.000000e+00> : vector<16x128xf32>
    %242 = tpu.matmul %240, %241, %cst_78 {dimension_numbers = #tpu.dot_dimension_numbers<[1], [0], [0], [1], [0, 0, 1, 1], [], []>} : vector<16x64xbf16>, vector<64x128xbf16>, vector<16x128xf32> -> vector<16x128xf32>
    %243 = vector.broadcast %162 : vector<1x128xf32> to vector<16x128xf32>
    %244 = arith.addf %242, %243 : vector<16x128xf32>
    %cst_79 = arith.constant 0.000000e+00 : f32
    %245 = vector.broadcast %cst_79 : f32 to vector<16x128xf32>
    %246 = arith.maximumf %244, %245 : vector<16x128xf32>
    %247 = arith.truncf %246 : vector<16x128xf32> to vector<16x128xbf16>
    %c512 = arith.constant 512 : index
    %c0_80 = arith.constant 0 : index
    %248 = vector.load %arg1[%c512, %c0_80] : memref<640x192xbf16, #tpu.memory_space<vmem>>, vector<128x64xbf16>
    %cst_81 = arith.constant dense<0.000000e+00> : vector<16x64xf32>
    %249 = tpu.matmul %247, %248, %cst_81 {dimension_numbers = #tpu.dot_dimension_numbers<[1], [0], [0], [1], [0, 0, 1, 1], [], []>} : vector<16x128xbf16>, vector<128x64xbf16>, vector<16x64xf32> -> vector<16x64xf32>
    %250 = vector.broadcast %163 : vector<1x64xf32> to vector<16x64xf32>
    %251 = arith.addf %249, %250 : vector<16x64xf32>
    %252 = arith.addf %239, %251 : vector<16x64xf32>
    %cst_82 = arith.constant dense<0.000000e+00> : vector<16xf32>
    %253 = vector.multi_reduction <add>, %252, %cst_82 [1] : vector<16x64xf32> to vector<16xf32>
    %254 = vector.shape_cast %253 : vector<16xf32> to vector<16x1xf32>
    %cst_83 = arith.constant 6.400000e+01 : f32
    %255 = vector.broadcast %cst_83 : f32 to vector<16x1xf32>
    %256 = arith.divf %254, %255 : vector<16x1xf32>
    %257 = vector.broadcast %256 : vector<16x1xf32> to vector<16x64xf32>
    %258 = arith.subf %252, %257 : vector<16x64xf32>
    %259 = arith.mulf %258, %258 : vector<16x64xf32>
    %cst_84 = arith.constant dense<0.000000e+00> : vector<16xf32>
    %260 = vector.multi_reduction <add>, %259, %cst_84 [1] : vector<16x64xf32> to vector<16xf32>
    %261 = vector.shape_cast %260 : vector<16xf32> to vector<16x1xf32>
    %cst_85 = arith.constant 6.400000e+01 : f32
    %262 = vector.broadcast %cst_85 : f32 to vector<16x1xf32>
    %263 = arith.divf %261, %262 : vector<16x1xf32>
    %cst_86 = arith.constant 9.99999974E-6 : f32
    %264 = vector.broadcast %cst_86 : f32 to vector<16x1xf32>
    %265 = arith.addf %263, %264 : vector<16x1xf32>
    %266 = math.rsqrt %265 : vector<16x1xf32>
    %267 = vector.broadcast %266 : vector<16x1xf32> to vector<16x64xf32>
    %268 = arith.mulf %258, %267 : vector<16x64xf32>
    %269 = vector.broadcast %159 : vector<1x64xf32> to vector<16x64xf32>
    %270 = arith.mulf %268, %269 : vector<16x64xf32>
    %271 = vector.broadcast %160 : vector<1x64xf32> to vector<16x64xf32>
    %272 = arith.addf %270, %271 : vector<16x64xf32>
    %c24 = arith.constant 24 : index
    %c0_87 = arith.constant 0 : index
    %273 = vector.load %arg2[%c24, %c0_87] : memref<88x192xf32, #tpu.memory_space<vmem>>, vector<64x128xf32>
    %c16 = arith.constant 16 : index
    %c0_88 = arith.constant 0 : index
    %274 = vector.load %arg2[%c16, %c0_88] : memref<88x192xf32, #tpu.memory_space<vmem>>, vector<1x128xf32>
    %275 = vector.extract_strided_slice %272 {offsets = [8, 0], sizes = [8, 64], strides = [1, 1]} : vector<16x64xf32> to vector<8x64xf32>
    %cst_89 = arith.constant dense<0.000000e+00> : vector<8x128xf32>
    %276 = tpu.matmul %275, %273, %cst_89 {dimension_numbers = #tpu.dot_dimension_numbers<[1], [0], [0], [1], [0, 0, 1, 1], [], []>} : vector<8x64xf32>, vector<64x128xf32>, vector<8x128xf32> -> vector<8x128xf32>
    %277 = vector.broadcast %274 : vector<1x128xf32> to vector<8x128xf32>
    %278 = arith.addf %276, %277 : vector<8x128xf32>
    %c0_90 = arith.constant 0 : index
    %c0_91 = arith.constant 0 : index
    %279 = vector.load %arg3[%c0_90, %c0_91] : memref<8x128xf32, #tpu.memory_space<vmem>>, vector<8x128xf32>
    tpu.vector_store %arg3[%c0_90, %c0_91], %278 {strides = array<i32>} : memref<8x128xf32, #tpu.memory_space<vmem>>, vector<8x128xf32>,
    return
  }
}

</mosaic_0001>

<bundles_post_ra>
// kernel: tpu_custom_call.1
= control target key start
LH: loop header
LB: loop body
LE: loop exit
PB: predicated region body
PF: predicated region fallthrough
CT: control target
= control target key end

     0   :  { %s2045_s0 = inlined_call_operand.vmem [shape: f32[16,64], index: 0, kind: input, shape index: {}]   ;;  %s2046_s1 = inlined_call_operand.vmem [shape: bf16[640,192], index: 1, kind: input, shape index: {}]   ;;  %s2047_s2 = inlined_call_operand.vmem [shape: f32[88,192], index: 2, kind: input, shape index: {}]   ;;  %s2048_s3 = inlined_call_operand.hbm [shape: f32[8,128], index: 3, kind: output, shape index: {}]  }
   0x1   :  { %v1173_v0 = vld [vmem:[%s2046_s1 + $0x30] sm:$0xf]  ;;  %v1364_v1 = vld [vmem:[%s2046_s1 + $0x34] sm:$0xf0]  ;;  %v1165_v2 = vld [vmem:[%s2046_s1 + $0x20] sm:$0xf] }
   0x2   :  { %v1174_v3 = vor.u32 %v1364_v1, %v1173_v0  ;;  %v1362_v4 = vld [vmem:[%s2046_s1 + $0x24] sm:$0xf0] }
   0x3   :  { %v1166_v5 = vor.u32 %v1362_v4, %v1165_v2 }
   0x4   :  { %133 = vmatpush.bf16.msra.mxu0 %v1174_v3 }
   0x5   :  { %8 = vsyncpa [#allocation3], 0  ;;  %v1157_v6 = vld [vmem:[%s2046_s1 + $0x10] sm:$0xf]  ;;  %v1360_v7 = vld [vmem:[%s2046_s1 + $0x14] sm:$0xf0]  ;;  %v16_v29 = vlaneseq }
   0x6   :  { %v1158_v8 = vor.u32 %v1360_v7, %v1157_v6  ;;  %v1149_v9 = vld [vmem:[%s2046_s1] sm:$0xf]  ;;  %v1358_v10 = vld [vmem:[%s2046_s1 + $0x4] sm:$0xf0]  ;;  %vm125_vm0 = vcmask 523264   ;;  %vm161_vm1 = vcmask 261120  }
   0x7   :  { %v1150_v11 = vor.u32 %v1358_v10, %v1149_v9  ;;  %v1548_v12 = vld [vmem:[%s2045_s0] sm:$0xff]  ;;  %v1553_v13 = vld [vmem:[%s2045_s0 + $0x8] sm:$0xff]  ;;  %s1495_s0 = smov 64   ;;  %v1363_v24 = vld [vmem:[%s2046_s1 + $0x34] sm:$0xf]  ;;  %v17_v33 = vshrl.u32 %v16_v29, 7 }
   0x8   :  { %134 = vmatpush.bf16.msra.mxu0 %v1166_v5  ;;  %v71_v14 = vpack.c.bf16 %v1553_v13, %v1548_v12  ;;  %v1561_v16 = vld [vmem:[%s2047_s2] ss:$8 sm:$0x3]  ;;  %v1175_v25 = vld [vmem:[%s2046_s1 + $0x38] sm:$0xf0]  ;;  %v20_v34 = vand.u32 127, %v16_v29 }
   0x9   :  { %v81_v17 = vperm.slane %v1561_v16, 0  ;;  %v1361_v26 = vld [vmem:[%s2046_s1 + $0x24] sm:$0xf]  ;;  %v1178_v27 = vor.u32 %v1363_v24, %v1175_v25  ;;  %v1167_v28 = vld [vmem:[%s2046_s1 + $0x28] sm:$0xf0]  ;;  %v25_v38 = vand.u32 1, %v17_v33 }
   0xa   :  { %v1170_v30 = vor.u32 %v1361_v26, %v1167_v28  ;;  %v1359_v31 = vld [vmem:[%s2046_s1 + $0x14] sm:$0xf]  ;;  %v1159_v32 = vld [vmem:[%s2046_s1 + $0x18] sm:$0xf0]  ;;  %v1357_v36 = vld [vmem:[%s2046_s1 + $0x4] sm:$0xf] }
   0xb   :  { %147 = vmatpush.bf16.msra.mxu1 %v1178_v27  ;;  %v1162_v35 = vor.u32 %v1359_v31, %v1159_v32  ;;  %v1151_v37 = vld [vmem:[%s2046_s1 + $0x8] sm:$0xf0]  ;;  %v49_v39 = vand.u32 1, %v20_v34  ;;  %v18_v41 = vadd.s32 8, %v17_v33  ;;  %v1496_v43 = vmov -1e+30  }
   0xc   :  { %135 = vmatpush.bf16.msra.mxu0 %v1158_v8  ;;  %v1154_v40 = vor.u32 %v1357_v36, %v1151_v37  ;;  %vm186_vm3 = vcmask 130048   ;;  %s1497_s23 = smov 96   ;;  %s1498_s24 = smov 32   ;;  %v82_v1 = vperm.slane %v1561_v16, 1 }
   0xd   :  { %vm57_vm2 = vcmp.eq.s32.totalorder %v25_v38, %v49_v39  ;;  %v32_v46 = vand.u32 1, %v18_v41  ;;  %s1500_s19 = smov [#allocation2]   ;;  %s1138_s25 = sshll.u32 %s2048_s3, 4  ;;  %s1139_s25 = int_to_ptr.hbm [resolvable:$true] %s1138_s25 }
   0xe   :  { %v1595_v44 = vsel %vm57_vm2, 0.0, %v1496_v43  ;;  %s1136_s20 = sshll.u32 %s1500_s19, 4  ;;  %s1137_s20 = int_to_ptr.vmem [resolvable:$true] %s1136_s20 }
   0xf   :  { %148 = vmatpush.bf16.msra.mxu1 %v1170_v30  ;;  %vm58_vm4 = vcmp.eq.s32.totalorder %v32_v46, %v49_v39 }
  0x10   :  { %136 = vmatpush.bf16.msra.mxu0 %v1150_v11  ;;  %v1600_v50 = vsel %vm58_vm4, 0.0, %v1496_v43 }
  0x13   :  { %1179 = vmatmul.msk.bf16.vlgmr.msra.gmra.mxu0 %vm125_vm0, %v71_v14  ;;  %149 = vmatpush.bf16.msra.mxu1 %v1162_v35 }
  0x17   :  { %150 = vmatpush.bf16.msra.mxu1 %v1154_v40 }
  0x1a   :  { %1180 = vmatmul.msk.bf16.vlgmr.msra.gmra.mxu1 %vm125_vm0, %v71_v14 }
  0x90   :  { %v138_v15 = vpop.f32.mrf.mxu0 }
  0x91   :  { %v139_v19 = vadd.f32 %v138_v15, %v81_v17 }
  0x97   :  { %v152_v0 = vpop.f32.mrf.mxu1 }
  0x98   :  { %v140_v18 = vpop.f32.mrf.mxu0  ;;  %v153_v3 = vadd.f32 %v152_v0, %v82_v1 }
  0x99   :  { %v141_v20 = vadd.f32 %v140_v18, %v81_v17 }
  0x9b   :  { %v1564_v21 = vpack.c.bf16 %v141_v20, %v139_v19 }
  0x9d   :  { %159 = vrot.lane.b32.xlu0 %v1564_v21, %s1495_s0 }
  0x9f   :  { %v154_v2 = vpop.f32.mrf.mxu1 }
  0xa0   :  { %v155_v4 = vadd.f32 %v154_v2, %v82_v1 }
  0xa2   :  { %v210_v5 = vpack.c.bf16 %v155_v4, %v153_v3 }
  0xa4   :  { %221 = vmatpush.bf16.msra.mxu3 %v210_v5 }
 0x10f   :  { %v160_v22 = vpop.permute.xlu0 %159 }
 0x110   :  { %v166_v23 = vsel %vm161_vm1, %v160_v22, 0 }
 0x111   :  { %175 = vmatpush.bf16.xpose.msra.mxu2 %v166_v23 }
 0x118   :  { %1181 = vmatmul.msk.bf16.vlgmr.msra.gmra.mxu2 %vm161_vm1, %v1564_v21 }
 0x19b   :  { %v177_v42 = vpop.f32.mrf.mxu2 }
 0x19c   :  { %v182_v45 = vmul.f32 0.17677669, %v177_v42 }
 0x19e   :  { %v184_v47 = vadd.f32 %v182_v45, %v1595_v44 }
 0x1a0   :  { %v187_v48 = vsel %vm186_vm3, %v184_v47, -inf }
 0x1a1   :  { %188 = vmax.xlane.f32.xlu0 %v187_v48  ;;  %v1368_v48 = vld [vmem:[%s2046_s1 + $0x74] sm:$0xf0] }
 0x1a3   :  { %v179_v49 = vpop.f32.mrf.mxu2 }
 0x1a4   :  { %v183_v51 = vmul.f32 0.17677669, %v179_v49  ;;  %v1195_v49 = vld [vmem:[%s2046_s1 + $0x60] sm:$0xf] }
 0x1a6   :  { %v185_v52 = vadd.f32 %v183_v51, %v1600_v50 }
 0x1a8   :  { %v190_v53 = vsel %vm186_vm3, %v185_v52, -inf }
 0x1a9   :  { %191 = vmax.xlane.f32.xlu1 %v190_v53 }
 0x214   :  { %v189_v54 = vpop.xlane.xlu0 %188 }
 0x215   :  { %v193_v55 = vsub.f32 %v184_v47, %v189_v54  ;;  %v1199_v47 = vld [vmem:[%s2046_s1 + $0x70] sm:$0xf] }
 0x216   :  { %v1200_v51 = vor.u32 %v1368_v48, %v1199_v47  ;;  %v1191_v54 = vld [vmem:[%s2046_s1 + $0x50] sm:$0xf]  ;;  %v1380_v48 = vld [vmem:[%s2046_s1 + $0x134] sm:$0xf0] }
 0x217   :  { %v195_v56 = vmul.f32 1.442695, %v193_v55  ;;  %v1366_v55 = vld [vmem:[%s2046_s1 + $0x54] sm:$0xf0]  ;;  %v1249_v47 = vld [vmem:[%s2046_s1 + $0x130] sm:$0xf] }
 0x219   :  { %1421 = vpow2.f32 %v195_v56  ;;  %v1192_v56 = vor.u32 %v1366_v55, %v1191_v54 }
 0x21c   :  { %v192_v57 = vpop.xlane.xlu1 %191 }
 0x21d   :  { %v194_v58 = vsub.f32 %v185_v52, %v192_v57  ;;  %v1367_v52 = vld [vmem:[%s2046_s1 + $0x64] sm:$0xf0] }
 0x21e   :  { %v1196_v53 = vor.u32 %v1367_v52, %v1195_v49  ;;  %v1245_v49 = vld [vmem:[%s2046_s1 + $0x120] sm:$0xf]  ;;  %v1250_v52 = vor.u32 %v1380_v48, %v1249_v47 }
 0x21f   :  { %v1422_v59 = vpop.eup %1421  ;;  %v197_v60 = vmul.f32 1.442695, %v194_v58 }
 0x220   :  { %v199_v61 = vsel %vm186_vm3, %v1422_v59, 0.0 }
 0x221   :  { %1423 = vpow2.f32 %v197_v60  ;;  %200 = vadd.xlane.f32.xlu1 %v199_v61  ;;  %v1187_v60 = vld [vmem:[%s2046_s1 + $0x40] sm:$0xf]  ;;  %v1365_v61 = vld [vmem:[%s2046_s1 + $0x44] sm:$0xf0] }
 0x227   :  { %v1424_v62 = vpop.eup %1423 }
 0x228   :  { %v202_v63 = vsel %vm186_vm3, %v1424_v62, 0.0 }
 0x229   :  { %203 = vadd.xlane.f32.xlu2 %v202_v63 }
 0x23a   :  { %228 = vrot.lane.b32.xlu1 %v1564_v21, %s1497_s23 }
 0x241   :  { %230 = vrot.lane.b32.xlu2 %v1564_v21, %s1498_s24 }
 0x294   :  { %v201_v6 = vpop.xlane.xlu1 %200 }
 0x295   :  { %1425 = vrcp.f32 %v201_v6 }
 0x29b   :  { %v1426_v8 = vpop.eup %1425 }
 0x29c   :  { %v204_v7 = vpop.xlane.xlu2 %203  ;;  %v207_v11 = vmul.f32 %v1426_v8, %v1422_v59 }
 0x29d   :  { %1427 = vrcp.f32 %v204_v7 }
 0x2a3   :  { %v1428_v9 = vpop.eup %1427 }
 0x2a4   :  { %v231_v10 = vpop.permute.xlu2 %230  ;;  %v208_v14 = vmul.f32 %v1428_v9, %v1424_v62  ;;  %v1188_v62 = vor.u32 %v1365_v61, %v1187_v60 }
 0x2a5   :  { %v236_v15 = vsel %vm161_vm1, %v231_v10, 0 }
 0x2a6   :  { %245 = vmatpush.bf16.xpose.msrb.mxu3 %v236_v15  ;;  %v209_v17 = vpack.c.bf16 %v208_v14, %v207_v11 }
 0x2a8   :  { %1182 = vmatmul.msk.bf16.vlgmr.msra.gmra.mxu3 %vm186_vm3, %v209_v17  ;;  %v1499_v17 = vmov 64.0  }
 0x2ac   :  { %v229_v16 = vpop.permute.xlu1 %228 }
 0x2ae   :  { %350 = vmatpush.bf16.msra.mxu3 %v1200_v51 }
 0x2b2   :  { %351 = vmatpush.bf16.msra.mxu3 %v1196_v53  ;;  %v1379_v53 = vld [vmem:[%s2046_s1 + $0x124] sm:$0xf0] }
 0x2b3   :  { %v1246_v55 = vor.u32 %v1379_v53, %v1245_v49 }
 0x2b6   :  { %352 = vmatpush.bf16.msra.mxu3 %v1192_v56 }
 0x2b8   :  { %1183 = vmatmul.msk.bf16.vlgmr.msrb.gmra.mxu3 %vm161_vm1, %v229_v16 }
 0x2ba   :  { %353 = vmatpush.bf16.msra.mxu3 %v1188_v62 }
 0x2be   :  { %534 = vmatpush.bf16.msrb.mxu3 %v1250_v52 }
 0x2c2   :  { %535 = vmatpush.bf16.msrb.mxu3 %v1246_v55 }
 0x32b   :  { %v1614_v18 = vpop.f32.mrf.mxu3 }
 0x333   :  { %v225_v19 = vpop.f32.mrf.mxu3 }
 0x33b   :  { %v247_v20 = vpop.f32.mrf.mxu3 }
 0x33c   :  { %v252_v21 = vmul.f32 0.17677669, %v247_v20 }
 0x33e   :  { %v254_v22 = vadd.f32 %v252_v21, %v1595_v44 }
 0x340   :  { %v256_v23 = vsel %vm186_vm3, %v254_v22, -inf }
 0x341   :  { %257 = vmax.xlane.f32.xlu2 %v256_v23 }
 0x343   :  { %v249_v24 = vpop.f32.mrf.mxu3 }
 0x344   :  { %v253_v25 = vmul.f32 0.17677669, %v249_v24 }
 0x346   :  { %v255_v26 = vadd.f32 %v253_v25, %v1600_v50 }
 0x348   :  { %v259_v27 = vsel %vm186_vm3, %v255_v26, -inf }
 0x349   :  { %260 = vmax.xlane.f32.xlu1 %v259_v27 }
 0x3b4   :  { %v258_v28 = vpop.xlane.xlu2 %257 }
 0x3b5   :  { %v262_v29 = vsub.f32 %v254_v22, %v258_v28 }
 0x3b7   :  { %v264_v30 = vmul.f32 1.442695, %v262_v29 }
 0x3b9   :  { %1429 = vpow2.f32 %v264_v30 }
 0x3bc   :  { %v261_v31 = vpop.xlane.xlu1 %260 }
 0x3bd   :  { %v263_v32 = vsub.f32 %v255_v26, %v261_v31  ;;  %v1216_v31 = vld [vmem:[%s2046_s1 + $0xb0] sm:$0xf] }
 0x3bf   :  { %v1430_v33 = vpop.eup %1429  ;;  %v266_v34 = vmul.f32 1.442695, %v263_v32  ;;  %v1372_v32 = vld [vmem:[%s2046_s1 + $0xb4] sm:$0xf0] }
 0x3c0   :  { %v268_v35 = vsel %vm186_vm3, %v1430_v33, 0.0 }
 0x3c1   :  { %1431 = vpow2.f32 %v266_v34  ;;  %269 = vadd.xlane.f32.xlu0 %v268_v35  ;;  %v1212_v34 = vld [vmem:[%s2046_s1 + $0xa0] sm:$0xf]  ;;  %v1371_v35 = vld [vmem:[%s2046_s1 + $0xa4] sm:$0xf0] }
 0x3c7   :  { %v1432_v36 = vpop.eup %1431 }
 0x3c8   :  { %v271_v37 = vsel %vm186_vm3, %v1432_v36, 0.0 }
 0x3c9   :  { %272 = vadd.xlane.f32.xlu0 %v271_v37  ;;  %v1208_v37 = vld [vmem:[%s2046_s1 + $0x90] sm:$0xf] }
 0x3dd   :  { %280 = vrot.lane.b32.xlu0 %v210_v5, %s1497_s23  ;;  %v68_v5 = vld [vmem:[%s2047_s2 + $0x5] ss:$0 sm:$0xff] }
 0x434   :  { %v270_v38 = vpop.xlane.xlu0 %269 }
 0x43c   :  { %v273_v39 = vpop.xlane.xlu0 %272 }
 0x43d   :  { %1433 = vrcp.f32 %v273_v39 }
 0x43e   :  { %1435 = vrcp.f32 %v270_v38  ;;  %v1370_v38 = vld [vmem:[%s2046_s1 + $0x94] sm:$0xf0] }
 0x43f   :  { %1437 = vrcp.f32 %v1499_v17  ;;  %v1209_v39 = vor.u32 %v1370_v38, %v1208_v37 }
 0x443   :  { %v1434_v40 = vpop.eup %1433 }
 0x444   :  { %v1436_v41 = vpop.eup %1435  ;;  %v277_v42 = vmul.f32 %v1434_v40, %v1432_v36  ;;  %v1213_v36 = vor.u32 %v1371_v35, %v1212_v34  ;;  %v1204_v40 = vld [vmem:[%s2046_s1 + $0x80] sm:$0xf] }
 0x445   :  { %v276_v43 = vmul.f32 %v1436_v41, %v1430_v33  ;;  %v1438_v16 = vpop.eup %1437  ;;  %v1217_v33 = vor.u32 %v1372_v32, %v1216_v31  ;;  %v1369_v41 = vld [vmem:[%s2046_s1 + $0x84] sm:$0xf0]  ;;  %v1221_v32 = vld [vmem:[%s2046_s1 + $0xc0] sm:$0xf] }
 0x446   :  { %vm373_vm5 = vweird.f32 %v1438_v16 }
 0x447   :  { %v278_v46 = vpack.c.bf16 %v277_v42, %v276_v43  ;;  %457 = vmatpush.bf16.msrb.mxu1 %v1217_v33  ;;  %v1205_v43 = vor.u32 %v1369_v41, %v1204_v40  ;;  %v1373_v33 = vld [vmem:[%s2046_s1 + $0xc4] sm:$0xf0] }
 0x448   :  { %v1222_v34 = vor.u32 %v1373_v33, %v1221_v32 }
 0x44b   :  { %458 = vmatpush.bf16.msrb.mxu1 %v1213_v36  ;;  %v69_v36 = vld [vmem:[%s2047_s2 + $0x6] ss:$0 sm:$0xff] }
 0x44f   :  { %v281_v45 = vpop.permute.xlu0 %280  ;;  %459 = vmatpush.bf16.msrb.mxu1 %v1209_v39 }
 0x450   :  { %293 = vmatpush.bf16.msrb.mxu2 %v281_v45 }
 0x453   :  { %1184 = vmatmul.msk.bf16.vlgmr.msrb.gmra.mxu2 %vm186_vm3, %v278_v46  ;;  %460 = vmatpush.bf16.msrb.mxu1 %v1205_v43  ;;  %v70_v43 = vld [vmem:[%s2047_s2 + $0x7] ss:$0 sm:$0xff] }
 0x4d6   :  { %v295_v57 = vpop.f32.mrf.mxu2 }
 0x4de   :  { %v297_v58 = vpop.f32.mrf.mxu2 }
 0x4df   :  { %v1411_v59 = vpack.i.bf16 %v297_v58, %v295_v57  ;;  %v1241_v58 = vld [vmem:[%s2046_s1 + $0x110] sm:$0xf] }
 0x4e1   :  { %1412 = vrot.lane.b32.xlu2 %v1411_v59, %s1498_s24  ;;  %v1378_v59 = vld [vmem:[%s2046_s1 + $0x114] sm:$0xf0] }
 0x4e2   :  { %v1242_v62 = vor.u32 %v1378_v59, %v1241_v58 }
 0x4e4   :  { %536 = vmatpush.bf16.msrb.mxu3 %v1242_v62 }
 0x53b   :  { %v1413_v63 = vpop.permute.xlu2 %1412 }
 0x53c   :  { %v1415_v0 = vunpack.i.h.bf16 %v1413_v63  ;;  %v1414_v1 = vunpack.i.l.bf16 %v1413_v63  ;;  %v1237_v63 = vld [vmem:[%s2046_s1 + $0x100] sm:$0xf] }
 0x53e   :  { %v309_v2 = vsel %vm161_vm1, %v225_v19, %v1415_v0  ;;  %v308_v3 = vsel %vm161_vm1, %v1614_v18, %v1414_v1  ;;  %v369_v18 = vmul.f32 64.0, %v1438_v16  ;;  %v1377_v0 = vld [vmem:[%s2046_s1 + $0x104] sm:$0xf0] }
 0x53f   :  { %v310_v4 = vpack.c.bf16 %v309_v2, %v308_v3  ;;  %v1238_v3 = vor.u32 %v1377_v0, %v1237_v63  ;;  %v1278_v0 = vld [vmem:[%s2046_s1 + $0x170] sm:$0xf] }
 0x540   :  { %v370_v19 = vsub.f32 1.0, %v369_v18 }
 0x541   :  { %1201 = vmatmul.msk.bf16.vlgmr.msra.gmra.mxu3 %vm125_vm0, %v310_v4 }
 0x542   :  { %v371_v20 = vmul.f32 %v1438_v16, %v370_v19  ;;  %537 = vmatpush.bf16.msrb.mxu3 %v1238_v3  ;;  %v65_v19 = vld [vmem:[%s2047_s2 + $0x2] ss:$0 sm:$0xff] }
 0x544   :  { %v372_v21 = vadd.f32 %v1438_v16, %v371_v20 }
 0x546   :  { %v1660_v22 = vsel %vm373_vm5, %v1438_v16, %v372_v21 }
 0x5c4   :  { %v355_v6 = vpop.f32.mrf.mxu3 }
 0x5c5   :  { %v356_v7 = vadd.f32 %v355_v6, %v68_v5 }
 0x5c7   :  { %v360_v8 = vadd.f32 %v356_v7, %v1548_v12 }
 0x5c9   :  { %v362_v9 = vsel %vm125_vm0, %v360_v8, 0.0 }
 0x5ca   :  { %363 = vadd.xlane.f32.xlu1 %v362_v9 }
 0x5cc   :  { %v357_v10 = vpop.f32.mrf.mxu3 }
 0x5cd   :  { %v358_v11 = vadd.f32 %v357_v10, %v68_v5 }
 0x5cf   :  { %v361_v14 = vadd.f32 %v358_v11, %v1553_v13 }
 0x5d1   :  { %v365_v15 = vsel %vm125_vm0, %v361_v14, 0.0 }
 0x5d2   :  { %366 = vadd.xlane.f32.xlu0 %v365_v15  ;;  %v64_v15 = vld [vmem:[%s2047_s2 + $0x1] ss:$0 sm:$0xff] }
 0x63d   :  { %v364_v12 = vpop.xlane.xlu1 %363 }
 0x63e   :  { %v375_v23 = vmul.f32 %v1660_v22, %v364_v12 }
 0x640   :  { %v1663_v24 = vsub.f32 %v360_v8, %v375_v23 }
 0x642   :  { %v379_v13 = vmul.f32 %v1663_v24, %v1663_v24 }
 0x644   :  { %v381_v25 = vsel %vm125_vm0, %v379_v13, 0.0  ;;  %v1376_v13 = vld [vmem:[%s2046_s1 + $0xf4] sm:$0xf0] }
 0x645   :  { %v367_v26 = vpop.xlane.xlu0 %366  ;;  %382 = vadd.xlane.f32.xlu1 %v381_v25 }
 0x646   :  { %v376_v27 = vmul.f32 %v1660_v22, %v367_v26  ;;  %v1229_v26 = vld [vmem:[%s2046_s1 + $0xe0] sm:$0xf] }
 0x648   :  { %v1669_v28 = vsub.f32 %v361_v14, %v376_v27  ;;  %v1375_v27 = vld [vmem:[%s2046_s1 + $0xe4] sm:$0xf0] }
 0x64a   :  { %v380_v29 = vmul.f32 %v1669_v28, %v1669_v28 }
 0x64c   :  { %v384_v30 = vsel %vm125_vm0, %v380_v29, 0.0  ;;  %v1225_v29 = vld [vmem:[%s2046_s1 + $0xd0] sm:$0xf] }
 0x64d   :  { %385 = vadd.xlane.f32.xlu2 %v384_v30  ;;  %v1374_v30 = vld [vmem:[%s2046_s1 + $0xd4] sm:$0xf0] }
 0x64e   :  { %v1226_v31 = vor.u32 %v1374_v30, %v1225_v29 }
 0x6b8   :  { %v383_v42 = vpop.xlane.xlu1 %382 }
 0x6b9   :  { %v387_v45 = vmul.f32 %v383_v42, %v1660_v22 }
 0x6bb   :  { %v389_v46 = vadd.f32 1e-05, %v387_v45 }
 0x6bd   :  { %1439 = vrsqrt.f32 %v389_v46  ;;  %vm397_vm7 = vweird.f32 %v389_v46 }
 0x6c0   :  { %v386_v51 = vpop.xlane.xlu2 %385 }
 0x6c1   :  { %v388_v54 = vmul.f32 %v386_v51, %v1660_v22 }
 0x6c3   :  { %v1440_v56 = vpop.eup %1439  ;;  %v390_v57 = vadd.f32 1e-05, %v388_v54 }
 0x6c4   :  { %v392_v60 = vmul.f32 %v1440_v56, %v389_v46  ;;  %vm398_vm6 = vweird.f32 %v1440_v56 }
 0x6c5   :  { %1441 = vrsqrt.f32 %v390_v57  ;;  %vm399_vm8 = vmor %vm397_vm7, %vm398_vm6  ;;  %vm407_vm10 = vweird.f32 %v390_v57 }
 0x6c6   :  { %v393_v61 = vmul.f32 %v1440_v56, %v392_v60 }
 0x6c8   :  { %v394_v1 = vmul.f32 0.5, %v393_v61 }
 0x6ca   :  { %v395_v2 = vsub.f32 1.5, %v394_v1  ;;  %v1388_v1 = vld [vmem:[%s2046_s1 + $0x174] sm:$0xf0] }
 0x6cb   :  { %v1442_v4 = vpop.eup %1441  ;;  %v1279_v3 = vor.u32 %v1388_v1, %v1278_v0 }
 0x6cc   :  { %v396_v5 = vmul.f32 %v1440_v56, %v395_v2  ;;  %v402_v6 = vmul.f32 %v1442_v4, %v390_v57  ;;  %vm408_vm9 = vweird.f32 %v1442_v4  ;;  %v1387_v2 = vld [vmem:[%s2046_s1 + $0x174] sm:$0xf] }
 0x6cd   :  { %vm409_vm11 = vmor %vm407_vm10, %vm408_vm9  ;;  %668 = vmatpush.bf16.msra.mxu2 %v1279_v3 }
 0x6ce   :  { %v403_v7 = vmul.f32 %v1442_v4, %v402_v6  ;;  %v400_v8 = vsel %vm399_vm8, %v1440_v56, %v396_v5  ;;  %v1270_v6 = vld [vmem:[%s2046_s1 + $0x160] sm:$0xf] }
 0x6cf   :  { %v411_v11 = vmul.f32 %v400_v8, %v1663_v24  ;;  %v1233_v24 = vld [vmem:[%s2046_s1 + $0xf0] sm:$0xf]  ;;  %v1385_v8 = vld [vmem:[%s2046_s1 + $0x164] sm:$0xf] }
 0x6d0   :  { %v404_v9 = vmul.f32 0.5, %v403_v7  ;;  %v1234_v25 = vor.u32 %v1376_v13, %v1233_v24  ;;  %v1386_v7 = vld [vmem:[%s2046_s1 + $0x164] sm:$0xf0]  ;;  %v1381_v24 = vld [vmem:[%s2046_s1 + $0x144] sm:$0xf] }
 0x6d1   :  { %v413_v18 = vmul.f32 %v411_v11, %v64_v15 }
 0x6d2   :  { %v405_v10 = vsub.f32 1.5, %v404_v9  ;;  %538 = vmatpush.bf16.msrb.mxu3 %v1234_v25  ;;  %v1271_v9 = vor.u32 %v1386_v7, %v1270_v6  ;;  %v1256_v25 = vld [vmem:[%s2046_s1 + $0x148] sm:$0xf0] }
 0x6d3   :  { %v415_v21 = vadd.f32 %v413_v18, %v65_v19  ;;  %v1264_v18 = vld [vmem:[%s2046_s1 + $0x158] sm:$0xf0] }
 0x6d4   :  { %v406_v14 = vmul.f32 %v1442_v4, %v405_v10  ;;  %v1272_v10 = vld [vmem:[%s2046_s1 + $0x168] sm:$0xf0]  ;;  %669 = vmatpush.bf16.msra.mxu2 %v1271_v9 }
 0x6d5   :  { %v1275_v11 = vor.u32 %v1385_v8, %v1272_v10 }
 0x6d6   :  { %v410_v17 = vsel %vm409_vm11, %v1442_v4, %v406_v14  ;;  %v1280_v4 = vld [vmem:[%s2046_s1 + $0x178] sm:$0xf0]  ;;  %v1262_v14 = vld [vmem:[%s2046_s1 + $0x150] sm:$0xf] }
 0x6d7   :  { %v412_v16 = vmul.f32 %v410_v17, %v1669_v28  ;;  %v1230_v28 = vor.u32 %v1375_v27, %v1229_v26  ;;  %v1283_v5 = vor.u32 %v1387_v2, %v1280_v4  ;;  %v1383_v17 = vld [vmem:[%s2046_s1 + $0x154] sm:$0xf]  ;;  %v1259_v27 = vor.u32 %v1381_v24, %v1256_v25 }
 0x6d9   :  { %v414_v20 = vmul.f32 %v412_v16, %v64_v15  ;;  %539 = vmatpush.bf16.msrb.mxu3 %v1230_v28  ;;  %682 = vmatpush.bf16.msrb.mxu0 %v1283_v5  ;;  %v1384_v15 = vld [vmem:[%s2046_s1 + $0x154] sm:$0xf0] }
 0x6da   :  { %v1263_v16 = vor.u32 %v1384_v15, %v1262_v14 }
 0x6db   :  { %v416_v12 = vadd.f32 %v414_v20, %v65_v19  ;;  %v1267_v19 = vor.u32 %v1383_v17, %v1264_v18 }
 0x6dc   :  { %670 = vmatpush.bf16.msra.mxu2 %v1263_v16 }
 0x6dd   :  { %v417_v23 = vpack.c.bf16 %v416_v12, %v415_v21  ;;  %540 = vmatpush.bf16.msrb.mxu3 %v1226_v31  ;;  %683 = vmatpush.bf16.msrb.mxu0 %v1275_v11 }
 0x6df   :  { %1218 = vmatmul.msk.bf16.vlgmr.msrb.gmra.mxu1 %vm125_vm0, %v417_v23  ;;  %v1382_v23 = vld [vmem:[%s2046_s1 + $0x144] sm:$0xf0] }
 0x6e1   :  { %541 = vmatpush.bf16.msrb.mxu3 %v1222_v34  ;;  %684 = vmatpush.bf16.msrb.mxu0 %v1267_v19 }
 0x6e5   :  { %685 = vmatpush.bf16.msrb.mxu0 %v1259_v27 }
 0x75c   :  { %v462_v35 = vpop.f32.mrf.mxu1 }
 0x75d   :  { %v463_v37 = vadd.f32 %v462_v35, %v69_v36 }
 0x75f   :  { %v467_v40 = vmax.f32 %v463_v37, 0.0 }
 0x764   :  { %v464_v38 = vpop.f32.mrf.mxu1 }
 0x765   :  { %v465_v39 = vadd.f32 %v464_v38, %v69_v36 }
 0x767   :  { %v468_v41 = vmax.f32 %v465_v39, 0.0 }
 0x769   :  { %v469_v42 = vpack.c.bf16 %v468_v41, %v467_v40 }
 0x76b   :  { %542 = vmatmul.bf16.vlgmr.msrb.gmra.mxu3 %v469_v42 }
 0x7ee   :  { %v543_v45 = vpop.f32.mrf.mxu3 }
 0x7ef   :  { %v544_v46 = vadd.f32 %v543_v45, %v70_v43  ;;  %v66_v45 = vld [vmem:[%s2047_s2 + $0x3] ss:$0 sm:$0xff] }
 0x7f1   :  { %v548_v47 = vadd.f32 %v544_v46, %v415_v21 }
 0x7f3   :  { %v550_v48 = vsel %vm125_vm0, %v548_v47, 0.0 }
 0x7f4   :  { %551 = vadd.xlane.f32.xlu1 %v550_v48 }
 0x7f6   :  { %v545_v49 = vpop.f32.mrf.mxu3 }
 0x7f7   :  { %v546_v51 = vadd.f32 %v545_v49, %v70_v43 }
 0x7f9   :  { %v549_v52 = vadd.f32 %v546_v51, %v416_v12  ;;  %v1254_v12 = vld [vmem:[%s2046_s1 + $0x140] sm:$0xf]  ;;  %v67_v51 = vld [vmem:[%s2047_s2 + $0x4] ss:$0 sm:$0xff] }
 0x7fa   :  { %v1255_v13 = vor.u32 %v1382_v23, %v1254_v12 }
 0x7fb   :  { %v553_v53 = vsel %vm125_vm0, %v549_v52, 0.0 }
 0x7fc   :  { %554 = vadd.xlane.f32.xlu1 %v553_v53  ;;  %671 = vmatpush.bf16.msra.mxu2 %v1255_v13 }
 0x867   :  { %v552_v54 = vpop.xlane.xlu1 %551 }
 0x868   :  { %v556_v55 = vmul.f32 %v552_v54, %v1660_v22 }
 0x86a   :  { %v1766_v56 = vsub.f32 %v548_v47, %v556_v55 }
 0x86c   :  { %v560_v57 = vmul.f32 %v1766_v56, %v1766_v56 }
 0x86e   :  { %v562_v58 = vsel %vm125_vm0, %v560_v57, 0.0  ;;  %v1251_v57 = vld [vmem:[%s2047_s2 + $0x10] ss:$8 sm:$0x3] }
 0x86f   :  { %563 = vadd.xlane.f32.xlu1 %v562_v58  ;;  %v555_v59 = vpop.xlane.xlu1 %554  ;;  %v618_v58 = vperm.slane %v1251_v57, 1 }
 0x870   :  { %v557_v60 = vmul.f32 %v555_v59, %v1660_v22 }
 0x872   :  { %v1772_v61 = vsub.f32 %v549_v52, %v557_v60 }
 0x874   :  { %v561_v62 = vmul.f32 %v1772_v61, %v1772_v61 }
 0x876   :  { %v565_v63 = vsel %vm125_vm0, %v561_v62, 0.0 }
 0x877   :  { %566 = vadd.xlane.f32.xlu1 %v565_v63  ;;  %v617_v63 = vperm.slane %v1251_v57, 0 }
 0x8e2   :  { %v564_v20 = vpop.xlane.xlu1 %563 }
 0x8e3   :  { %v568_v21 = vmul.f32 %v564_v20, %v1660_v22 }
 0x8e5   :  { %v570_v26 = vadd.f32 1e-05, %v568_v21 }
 0x8e7   :  { %1443 = vrsqrt.f32 %v570_v26  ;;  %vm578_vm13 = vweird.f32 %v570_v26 }
 0x8ea   :  { %v567_v28 = vpop.xlane.xlu1 %566 }
 0x8eb   :  { %v569_v29 = vmul.f32 %v567_v28, %v1660_v22 }
 0x8ed   :  { %v1444_v30 = vpop.eup %1443  ;;  %v571_v31 = vadd.f32 1e-05, %v569_v29 }
 0x8ee   :  { %v573_v32 = vmul.f32 %v1444_v30, %v570_v26  ;;  %vm579_vm12 = vweird.f32 %v1444_v30 }
 0x8ef   :  { %1445 = vrsqrt.f32 %v571_v31  ;;  %vm580_vm14 = vmor %vm578_vm13, %vm579_vm12  ;;  %vm588_vm2 = vweird.f32 %v571_v31 }
 0x8f0   :  { %v574_v33 = vmul.f32 %v1444_v30, %v573_v32 }
 0x8f2   :  { %v575_v34 = vmul.f32 0.5, %v574_v33 }
 0x8f4   :  { %v576_v35 = vsub.f32 1.5, %v575_v34 }
 0x8f5   :  { %v1446_v36 = vpop.eup %1445 }
 0x8f6   :  { %v577_v37 = vmul.f32 %v1444_v30, %v576_v35  ;;  %v583_v38 = vmul.f32 %v1446_v36, %v571_v31  ;;  %vm589_vm15 = vweird.f32 %v1446_v36 }
 0x8f7   :  { %vm590_vm4 = vmor %vm588_vm2, %vm589_vm15 }
 0x8f8   :  { %v584_v39 = vmul.f32 %v1446_v36, %v583_v38  ;;  %v581_v40 = vsel %vm580_vm14, %v1444_v30, %v577_v37 }
 0x8f9   :  { %v592_v43 = vmul.f32 %v581_v40, %v1766_v56 }
 0x8fa   :  { %v585_v41 = vmul.f32 0.5, %v584_v39 }
 0x8fb   :  { %v594_v48 = vmul.f32 %v592_v43, %v66_v45 }
 0x8fc   :  { %v586_v42 = vsub.f32 1.5, %v585_v41 }
 0x8fd   :  { %v1835_v53 = vadd.f32 %v594_v48, %v67_v51 }
 0x8fe   :  { %v587_v46 = vmul.f32 %v1446_v36, %v586_v42 }
 0x900   :  { %v591_v47 = vsel %vm590_vm4, %v1446_v36, %v587_v46 }
 0x901   :  { %v593_v49 = vmul.f32 %v591_v47, %v1772_v61 }
 0x903   :  { %v595_v52 = vmul.f32 %v593_v49, %v66_v45 }
 0x905   :  { %v1837_v54 = vadd.f32 %v595_v52, %v67_v51 }
 0x907   :  { %v607_v55 = vpack.c.bf16 %v1837_v54, %v1835_v53 }
 0x909   :  { %1284 = vmatmul.msk.bf16.vlgmr.msra.gmra.mxu2 %vm125_vm0, %v607_v55  ;;  %1285 = vmatmul.msk.bf16.vlgmr.msrb.gmra.mxu0 %vm125_vm0, %v607_v55 }
 0x986   :  { %v687_v56 = vpop.f32.mrf.mxu0 }
 0x987   :  { %v688_v61 = vadd.f32 %v687_v56, %v618_v58 }
 0x98c   :  { %v673_v59 = vpop.f32.mrf.mxu2 }
 0x98d   :  { %v674_v2 = vadd.f32 %v673_v59, %v617_v63 }
 0x98e   :  { %v689_v60 = vpop.f32.mrf.mxu0 }
 0x98f   :  { %v690_v62 = vadd.f32 %v689_v60, %v618_v58 }
 0x991   :  { %v743_v0 = vpack.c.bf16 %v690_v62, %v688_v61 }
 0x993   :  { %754 = vmatpush.bf16.msrb.mxu2 %v743_v0 }
 0x994   :  { %v675_v1 = vpop.f32.mrf.mxu2 }
 0x995   :  { %v676_v3 = vadd.f32 %v675_v1, %v617_v63  ;;  %v1392_v1 = vld [vmem:[%s2046_s1 + $0x1b4] sm:$0xf0] }
 0x997   :  { %v692_v4 = vpack.c.bf16 %v676_v3, %v674_v2  ;;  %v1300_v2 = vld [vmem:[%s2046_s1 + $0x1a0] sm:$0xf] }
 0x999   :  { %694 = vrot.lane.b32.xlu2 %v692_v4, %s1495_s0  ;;  %761 = vrot.lane.b32.xlu1 %v692_v4, %s1497_s23 }
 0x99a   :  { %763 = vrot.lane.b32.xlu0 %v692_v4, %s1498_s24 }
 0x9f3   :  { %v695_v5 = vpop.permute.xlu2 %694 }
 0x9f4   :  { %v700_v6 = vsel %vm161_vm1, %v695_v5, 0 }
 0x9f5   :  { %709 = vmatpush.bf16.xpose.msra.mxu1 %v700_v6  ;;  %v1296_v6 = vld [vmem:[%s2046_s1 + $0x190] sm:$0xf] }
 0x9fc   :  { %1286 = vmatmul.msk.bf16.vlgmr.msra.gmra.mxu1 %vm161_vm1, %v692_v4  ;;  %v1391_v4 = vld [vmem:[%s2046_s1 + $0x1a4] sm:$0xf0] }
 0x9fd   :  { %v1301_v5 = vor.u32 %v1391_v4, %v1300_v2  ;;  %v1346_v4 = vld [vmem:[%s2046_s1 + $0x250] sm:$0xf] }
 0xa0b   :  { %v762_v9 = vpop.permute.xlu1 %761 }
 0xa0c   :  { %v764_v7 = vpop.permute.xlu0 %763 }
 0xa0d   :  { %v769_v8 = vsel %vm161_vm1, %v764_v7, 0  ;;  %v1390_v7 = vld [vmem:[%s2046_s1 + $0x194] sm:$0xf0] }
 0xa0e   :  { %778 = vmatpush.bf16.xpose.msra.mxu0 %v769_v8  ;;  %v1297_v8 = vor.u32 %v1390_v7, %v1296_v6 }
 0xa15   :  { %1288 = vmatmul.msk.bf16.vlgmr.msra.gmra.mxu0 %vm161_vm1, %v762_v9 }
 0xa79   :  { %v711_v10 = vpop.f32.mrf.mxu1 }
 0xa7a   :  { %v716_v11 = vmul.f32 0.17677669, %v711_v10 }
 0xa7c   :  { %v718_v14 = vadd.f32 %v716_v11, %v1595_v44 }
 0xa7e   :  { %v720_v15 = vsel %vm186_vm3, %v718_v14, -inf }
 0xa7f   :  { %721 = vmax.xlane.f32.xlu2 %v720_v15  ;;  %v1389_v15 = vld [vmem:[%s2046_s1 + $0x184] sm:$0xf0] }
 0xa81   :  { %v713_v18 = vpop.f32.mrf.mxu1 }
 0xa82   :  { %v717_v20 = vmul.f32 0.17677669, %v713_v18 }
 0xa84   :  { %v719_v24 = vadd.f32 %v717_v20, %v1600_v50 }
 0xa86   :  { %v723_v25 = vsel %vm186_vm3, %v719_v24, -inf }
 0xa92   :  { %v780_v17 = vpop.f32.mrf.mxu0 }
 0xa93   :  { %v785_v16 = vmul.f32 0.17677669, %v780_v17 }
 0xa95   :  { %v787_v19 = vadd.f32 %v785_v16, %v1595_v44 }
 0xa97   :  { %813 = vrot.lane.b32.xlu2 %v743_v0, %s1497_s23  ;;  %v789_v21 = vsel %vm186_vm3, %v787_v19, -inf  ;;  %v1304_v0 = vld [vmem:[%s2046_s1 + $0x1b0] sm:$0xf] }
 0xa98   :  { %790 = vmax.xlane.f32.xlu0 %v789_v21  ;;  %v1305_v3 = vor.u32 %v1392_v1, %v1304_v0 }
 0xa9a   :  { %v782_v12 = vpop.f32.mrf.mxu0  ;;  %883 = vmatpush.bf16.msra.mxu3 %v1305_v3 }
 0xa9b   :  { %v786_v23 = vmul.f32 0.17677669, %v782_v12 }
 0xa9d   :  { %v788_v13 = vadd.f32 %v786_v23, %v1600_v50 }
 0xa9e   :  { %884 = vmatpush.bf16.msra.mxu3 %v1301_v5  ;;  %v1402_v5 = vld [vmem:[%s2046_s1 + $0x254] sm:$0xf0] }
 0xa9f   :  { %v792_v26 = vsel %vm186_vm3, %v788_v13, -inf }
 0xaa0   :  { %724 = vmax.xlane.f32.xlu0 %v723_v25  ;;  %793 = vmax.xlane.f32.xlu1 %v792_v26 }
 0xaa2   :  { %885 = vmatpush.bf16.msra.mxu3 %v1297_v8  ;;  %v1347_v8 = vor.u32 %v1402_v5, %v1346_v4  ;;  %v1101_v4 = vld [vmem:[%s2047_s2 + $0x60] sm:$0xff]  ;;  %v1100_v5 = vld [vmem:[%s2047_s2 + $0x50] sm:$0xff] }
 0xaf2   :  { %v722_v27 = vpop.xlane.xlu2 %721 }
 0xaf3   :  { %v726_v30 = vsub.f32 %v718_v14, %v722_v27  ;;  %v1292_v14 = vld [vmem:[%s2046_s1 + $0x180] sm:$0xf] }
 0xaf4   :  { %v1293_v17 = vor.u32 %v1389_v15, %v1292_v14 }
 0xaf5   :  { %v728_v32 = vmul.f32 1.442695, %v726_v30 }
 0xaf6   :  { %886 = vmatpush.bf16.msra.mxu3 %v1293_v17 }
 0xafa   :  { %v814_v44 = vpop.permute.xlu2 %813 }
 0xafb   :  { %826 = vmatpush.bf16.msrb.mxu1 %v814_v44 }
 0xb0b   :  { %v791_v28 = vpop.xlane.xlu0 %790 }
 0xb0c   :  { %v795_v29 = vsub.f32 %v787_v19, %v791_v28 }
 0xb0e   :  { %v797_v31 = vmul.f32 1.442695, %v795_v29 }
 0xb10   :  { %1447 = vpow2.f32 %v797_v31 }
 0xb11   :  { %1449 = vpow2.f32 %v728_v32 }
 0xb13   :  { %v794_v33 = vpop.xlane.xlu1 %793  ;;  %v725_v34 = vpop.xlane.xlu0 %724 }
 0xb14   :  { %v796_v35 = vsub.f32 %v788_v13, %v794_v33  ;;  %v727_v37 = vsub.f32 %v719_v24, %v725_v34  ;;  %v604_v13 = vld [vmem:[%s2047_s2 + $0x15] ss:$0 sm:$0xff] }
 0xb16   :  { %v1448_v36 = vpop.eup %1447  ;;  %v799_v50 = vmul.f32 1.442695, %v796_v35  ;;  %v730_v39 = vmul.f32 1.442695, %v727_v37 }
 0xb17   :  { %v801_v38 = vsel %vm186_vm3, %v1448_v36, 0.0  ;;  %v1450_v40 = vpop.eup %1449 }
 0xb18   :  { %802 = vadd.xlane.f32.xlu0 %v801_v38  ;;  %1451 = vpow2.f32 %v799_v50  ;;  %v732_v42 = vsel %vm186_vm3, %v1450_v40, 0.0 }
 0xb19   :  { %1453 = vpow2.f32 %v730_v39  ;;  %v1321_v39 = vld [vmem:[%s2046_s1 + $0x1f0] sm:$0xf] }
 0xb1e   :  { %v1452_v41 = vpop.eup %1451 }
 0xb1f   :  { %v804_v43 = vsel %vm186_vm3, %v1452_v41, 0.0  ;;  %v1454_v45 = vpop.eup %1453 }
 0xb20   :  { %733 = vadd.xlane.f32.xlu0 %v732_v42  ;;  %805 = vadd.xlane.f32.xlu1 %v804_v43  ;;  %v735_v46 = vsel %vm186_vm3, %v1454_v45, 0.0  ;;  %v1317_v42 = vld [vmem:[%s2046_s1 + $0x1e0] sm:$0xf]  ;;  %v1395_v43 = vld [vmem:[%s2046_s1 + $0x1e4] sm:$0xf0] }
 0xb28   :  { %736 = vadd.xlane.f32.xlu1 %v735_v46  ;;  %v1313_v46 = vld [vmem:[%s2046_s1 + $0x1d0] sm:$0xf] }
 0xb8b   :  { %v803_v47 = vpop.xlane.xlu0 %802 }
 0xb8c   :  { %1455 = vrcp.f32 %v803_v47  ;;  %v1394_v47 = vld [vmem:[%s2046_s1 + $0x1d4] sm:$0xf0] }
 0xb92   :  { %v1456_v51 = vpop.eup %1455 }
 0xb93   :  { %v806_v48 = vpop.xlane.xlu1 %805  ;;  %v734_v49 = vpop.xlane.xlu0 %733  ;;  %v809_v55 = vmul.f32 %v1456_v51, %v1448_v36 }
 0xb94   :  { %1457 = vrcp.f32 %v806_v48  ;;  %v1314_v48 = vor.u32 %v1394_v47, %v1313_v46 }
 0xb95   :  { %1459 = vrcp.f32 %v734_v49 }
 0xb9a   :  { %v1458_v52 = vpop.eup %1457 }
 0xb9b   :  { %v810_v56 = vmul.f32 %v1458_v52, %v1452_v41  ;;  %v737_v57 = vpop.xlane.xlu1 %736  ;;  %v1460_v59 = vpop.eup %1459  ;;  %v1309_v52 = vld [vmem:[%s2046_s1 + $0x1c0] sm:$0xf] }
 0xb9c   :  { %1461 = vrcp.f32 %v737_v57  ;;  %v740_v61 = vmul.f32 %v1460_v59, %v1450_v40  ;;  %v1396_v40 = vld [vmem:[%s2046_s1 + $0x1f4] sm:$0xf0] }
 0xb9d   :  { %v811_v58 = vpack.c.bf16 %v810_v56, %v809_v55  ;;  %v1322_v41 = vor.u32 %v1396_v40, %v1321_v39  ;;  %v1393_v55 = vld [vmem:[%s2046_s1 + $0x1c4] sm:$0xf0]  ;;  %v1404_v59 = vld [vmem:[%s2046_s1 + $0x274] sm:$0xf0] }
 0xb9e   :  { %v1310_v56 = vor.u32 %v1393_v55, %v1309_v52  ;;  %v1397_v39 = vld [vmem:[%s2046_s1 + $0x204] sm:$0xf0]  ;;  %v606_v52 = vld [vmem:[%s2047_s2 + $0x17] ss:$0 sm:$0xff] }
 0xb9f   :  { %1289 = vmatmul.msk.bf16.vlgmr.msrb.gmra.mxu1 %vm186_vm3, %v811_v58  ;;  %983 = vmatpush.bf16.msra.mxu2 %v1322_v41  ;;  %v1354_v58 = vld [vmem:[%s2046_s1 + $0x270] sm:$0xf] }
 0xba2   :  { %v1462_v60 = vpop.eup %1461 }
 0xba3   :  { %v741_v62 = vmul.f32 %v1462_v60, %v1454_v45  ;;  %v1318_v45 = vor.u32 %v1395_v43, %v1317_v42  ;;  %v1350_v60 = vld [vmem:[%s2046_s1 + $0x260] sm:$0xf]  ;;  %v605_v42 = vld [vmem:[%s2047_s2 + $0x16] ss:$0 sm:$0xff] }
 0xba5   :  { %v742_v63 = vpack.c.bf16 %v741_v62, %v740_v61  ;;  %984 = vmatpush.bf16.msra.mxu2 %v1318_v45  ;;  %v1355_v62 = vor.u32 %v1404_v59, %v1354_v58 }
 0xba7   :  { %1287 = vmatmul.msk.bf16.vlgmr.msrb.gmra.mxu2 %vm186_vm3, %v742_v63  ;;  %v1403_v63 = vld [vmem:[%s2046_s1 + $0x264] sm:$0xf0]  ;;  %1060 = vmatpush.bf16.msrb.mxu0 %v1355_v62 }
 0xba8   :  { %v1351_v1 = vor.u32 %v1403_v63, %v1350_v60 }
 0xba9   :  { %985 = vmatpush.bf16.msra.mxu2 %v1314_v48 }
 0xbab   :  { %1061 = vmatpush.bf16.msrb.mxu0 %v1351_v1  ;;  %v1104_v1 = vld [vmem:[%s2047_s2 + $0x90] sm:$0xff] }
 0xbad   :  { %986 = vmatpush.bf16.msra.mxu2 %v1310_v56 }
 0xbaf   :  { %1062 = vmatpush.bf16.msrb.mxu0 %v1347_v8 }
 0xc1c   :  { %v828_v9 = vpop.f32.mrf.mxu1 }
 0xc24   :  { %v830_v10 = vpop.f32.mrf.mxu1 }
 0xc25   :  { %v1416_v11 = vpack.i.bf16 %v830_v10, %v828_v9  ;;  %v1342_v9 = vld [vmem:[%s2046_s1 + $0x240] sm:$0xf]  ;;  %v1401_v10 = vld [vmem:[%s2046_s1 + $0x244] sm:$0xf0] }
 0xc26   :  { %v1343_v15 = vor.u32 %v1401_v10, %v1342_v9 }
 0xc27   :  { %1417 = vrot.lane.b32.xlu0 %v1416_v11, %s1498_s24 }
 0xc28   :  { %1063 = vmatpush.bf16.msrb.mxu0 %v1343_v15 }
 0xc2a   :  { %v756_v16 = vpop.f32.mrf.mxu2 }
 0xc32   :  { %v758_v21 = vpop.f32.mrf.mxu2 }
 0xc99   :  { %v1418_v18 = vpop.permute.xlu0 %1417 }
 0xc9a   :  { %v1420_v19 = vunpack.i.h.bf16 %v1418_v18  ;;  %v1419_v20 = vunpack.i.l.bf16 %v1418_v18 }
 0xc9c   :  { %v841_v12 = vsel %vm161_vm1, %v756_v16, %v1419_v20  ;;  %v842_v23 = vsel %vm161_vm1, %v758_v21, %v1420_v19 }
 0xc9d   :  { %v843_v24 = vpack.c.bf16 %v842_v23, %v841_v12 }
 0xc9f   :  { %1306 = vmatmul.msk.bf16.vlgmr.msra.gmra.mxu3 %vm125_vm0, %v843_v24  ;;  %v600_v24 = vld [vmem:[%s2047_s2 + $0x11] ss:$0 sm:$0xff] }
 0xd22   :  { %v888_v25 = vpop.f32.mrf.mxu3 }
 0xd23   :  { %v889_v26 = vadd.f32 %v888_v25, %v604_v13 }
 0xd25   :  { %v893_v27 = vadd.f32 %v889_v26, %v1835_v53 }
 0xd27   :  { %v895_v44 = vsel %vm125_vm0, %v893_v27, 0.0 }
 0xd28   :  { %896 = vadd.xlane.f32.xlu1 %v895_v44  ;;  %v601_v44 = vld [vmem:[%s2047_s2 + $0x12] ss:$0 sm:$0xff] }
 0xd2a   :  { %v890_v28 = vpop.f32.mrf.mxu3 }
 0xd2b   :  { %v891_v29 = vadd.f32 %v890_v28, %v604_v13 }
 0xd2d   :  { %v894_v30 = vadd.f32 %v891_v29, %v1837_v54 }
 0xd2f   :  { %v898_v31 = vsel %vm125_vm0, %v894_v30, 0.0 }
 0xd30   :  { %899 = vadd.xlane.f32.xlu1 %v898_v31 }
 0xd9b   :  { %v897_v32 = vpop.xlane.xlu1 %896 }
 0xd9c   :  { %v901_v33 = vmul.f32 %v897_v32, %v1660_v22  ;;  %v1338_v32 = vld [vmem:[%s2046_s1 + $0x230] sm:$0xf] }
 0xd9e   :  { %v1904_v34 = vsub.f32 %v893_v27, %v901_v33  ;;  %v1400_v33 = vld [vmem:[%s2046_s1 + $0x234] sm:$0xf0] }
 0xda0   :  { %v905_v35 = vmul.f32 %v1904_v34, %v1904_v34 }
 0xda2   :  { %v907_v53 = vsel %vm125_vm0, %v905_v35, 0.0  ;;  %v1334_v35 = vld [vmem:[%s2046_s1 + $0x220] sm:$0xf] }
 0xda3   :  { %908 = vadd.xlane.f32.xlu2 %v907_v53  ;;  %v900_v36 = vpop.xlane.xlu1 %899  ;;  %v1399_v53 = vld [vmem:[%s2046_s1 + $0x224] sm:$0xf0] }
 0xda4   :  { %v902_v50 = vmul.f32 %v900_v36, %v1660_v22  ;;  %v1335_v36 = vor.u32 %v1399_v53, %v1334_v35 }
 0xda6   :  { %v1910_v37 = vsub.f32 %v894_v30, %v902_v50  ;;  %v1330_v50 = vld [vmem:[%s2046_s1 + $0x210] sm:$0xf] }
 0xda8   :  { %v906_v54 = vmul.f32 %v1910_v37, %v1910_v37 }
 0xdaa   :  { %v910_v38 = vsel %vm125_vm0, %v906_v54, 0.0 }
 0xdab   :  { %911 = vadd.xlane.f32.xlu1 %v910_v38  ;;  %v1326_v38 = vld [vmem:[%s2046_s1 + $0x200] sm:$0xf] }
 0xdac   :  { %v1327_v40 = vor.u32 %v1397_v39, %v1326_v38 }
 0xe16   :  { %v909_v49 = vpop.xlane.xlu2 %908 }
 0xe17   :  { %v913_v51 = vmul.f32 %v909_v49, %v1660_v22 }
 0xe19   :  { %v915_v57 = vadd.f32 1e-05, %v913_v51 }
 0xe1b   :  { %1463 = vrsqrt.f32 %v915_v57  ;;  %vm923_vm3 = vweird.f32 %v915_v57 }
 0xe1e   :  { %v912_v61 = vpop.xlane.xlu1 %911 }
 0xe1f   :  { %v914_v0 = vmul.f32 %v912_v61, %v1660_v22 }
 0xe21   :  { %v1464_v2 = vpop.eup %1463  ;;  %v916_v3 = vadd.f32 1e-05, %v914_v0  ;;  %v1105_v0 = vld [vmem:[%s2047_s2 + $0xa0] sm:$0xff] }
 0xe22   :  { %v918_v6 = vmul.f32 %v1464_v2, %v915_v57  ;;  %vm924_vm1 = vweird.f32 %v1464_v2  ;;  %1118 = vmatpush.msra.mxu1 %v1105_v0 }
 0xe23   :  { %1465 = vrsqrt.f32 %v916_v3  ;;  %vm925_vm5 = vmor %vm923_vm3, %vm924_vm1  ;;  %vm933_vm7 = vweird.f32 %v916_v3 }
 0xe24   :  { %v919_v7 = vmul.f32 %v1464_v2, %v918_v6  ;;  %1119 = vmatpush.msra.mxu1 %v1104_v1  ;;  %v1099_v6 = vld [vmem:[%s2047_s2 + $0x40] sm:$0xff] }
 0xe26   :  { %v920_v11 = vmul.f32 0.5, %v919_v7  ;;  %v1098_v7 = vld [vmem:[%s2047_s2 + $0x30] sm:$0xff] }
 0xe28   :  { %v921_v14 = vsub.f32 1.5, %v920_v11 }
 0xe29   :  { %v1466_v17 = vpop.eup %1465 }
 0xe2a   :  { %v922_v16 = vmul.f32 %v1464_v2, %v921_v14  ;;  %v928_v18 = vmul.f32 %v1466_v17, %v916_v3  ;;  %vm934_vm6 = vweird.f32 %v1466_v17  ;;  %v1102_v3 = vld [vmem:[%s2047_s2 + $0x70] sm:$0xff] }
 0xe2b   :  { %vm935_vm8 = vmor %vm933_vm7, %vm934_vm6 }
 0xe2c   :  { %v929_v19 = vmul.f32 %v1466_v17, %v928_v18  ;;  %v926_v20 = vsel %vm925_vm5, %v1464_v2, %v922_v16  ;;  %v1103_v2 = vld [vmem:[%s2047_s2 + $0x80] sm:$0xff] }
 0xe2d   :  { %v937_v23 = vmul.f32 %v926_v20, %v1904_v34  ;;  %v1339_v34 = vor.u32 %v1400_v33, %v1338_v32  ;;  %1120 = vmatpush.msra.mxu1 %v1103_v2 }
 0xe2e   :  { %v930_v21 = vmul.f32 0.5, %v929_v19  ;;  %v602_v19 = vld [vmem:[%s2047_s2 + $0x13] ss:$0 sm:$0xff] }
 0xe2f   :  { %v939_v26 = vmul.f32 %v937_v23, %v600_v24  ;;  %1064 = vmatpush.bf16.msrb.mxu0 %v1339_v34  ;;  %1121 = vmatpush.msra.mxu1 %v1102_v3 }
 0xe30   :  { %v931_v12 = vsub.f32 1.5, %v930_v21 }
 0xe31   :  { %v941_v29 = vadd.f32 %v939_v26, %v601_v44  ;;  %1122 = vmatpush.msra.mxu1 %v1101_v4 }
 0xe32   :  { %v932_v13 = vmul.f32 %v1466_v17, %v931_v12 }
 0xe33   :  { %1065 = vmatpush.bf16.msrb.mxu0 %v1335_v36  ;;  %1123 = vmatpush.msra.mxu1 %v1100_v5 }
 0xe34   :  { %v936_v25 = vsel %vm935_vm8, %v1466_v17, %v932_v13 }
 0xe35   :  { %v938_v27 = vmul.f32 %v936_v25, %v1910_v37  ;;  %v1398_v37 = vld [vmem:[%s2046_s1 + $0x214] sm:$0xf0]  ;;  %1124 = vmatpush.msra.mxu1 %v1099_v6 }
 0xe36   :  { %v1331_v54 = vor.u32 %v1398_v37, %v1330_v50 }
 0xe37   :  { %v940_v28 = vmul.f32 %v938_v27, %v600_v24  ;;  %1125 = vmatpush.msra.mxu1 %v1098_v7  ;;  %v1106_v24 = vld [vmem:[%s2047_s2 + $0x20] ss:$0 sm:$0xff] }
 0xe38   :  { %1066 = vmatpush.bf16.msrb.mxu0 %v1331_v54 }
 0xe39   :  { %v942_v30 = vadd.f32 %v940_v28, %v601_v44 }
 0xe3b   :  { %v943_v31 = vpack.c.bf16 %v942_v30, %v941_v29 }
 0xe3c   :  { %1067 = vmatpush.bf16.msrb.mxu0 %v1327_v40 }
 0xe3d   :  { %1323 = vmatmul.msk.bf16.vlgmr.msra.gmra.mxu2 %vm125_vm0, %v943_v31 }
 0xec0   :  { %v988_v41 = vpop.f32.mrf.mxu2 }
 0xec1   :  { %v989_v43 = vadd.f32 %v988_v41, %v605_v42 }
 0xec3   :  { %v993_v47 = vmax.f32 %v989_v43, 0.0 }
 0xec8   :  { %v990_v45 = vpop.f32.mrf.mxu2 }
 0xec9   :  { %v991_v46 = vadd.f32 %v990_v45, %v605_v42 }
 0xecb   :  { %v994_v48 = vmax.f32 %v991_v46, 0.0 }
 0xecd   :  { %v995_v49 = vpack.c.bf16 %v994_v48, %v993_v47 }
 0xecf   :  { %1068 = vmatmul.bf16.vlgmr.msrb.gmra.mxu0 %v995_v49 }
 0xf4c   :  { %v1069_v51 = vpop.f32.mrf.mxu0 }
 0xf54   :  { %v1070_v55 = vpop.f32.mrf.mxu0 }
 0xf55   :  { %v1071_v56 = vadd.f32 %v1070_v55, %v606_v52 }
 0xf57   :  { %v1073_v57 = vadd.f32 %v1071_v56, %v942_v30 }
 0xf59   :  { %v1074_v58 = vsel %vm125_vm0, %v1073_v57, 0.0 }
 0xf5a   :  { %1075 = vadd.xlane.f32.xlu0 %v1074_v58 }
 0xfcd   :  { %v1076_v59 = vpop.xlane.xlu0 %1075 }
 0xfce   :  { %v1077_v60 = vmul.f32 %v1076_v59, %v1660_v22 }
 0xfd0   :  { %v1078_v61 = vsub.f32 %v1073_v57, %v1077_v60 }
 0xfd2   :  { %v1079_v62 = vmul.f32 %v1078_v61, %v1078_v61 }
 0xfd4   :  { %v1080_v63 = vsel %vm125_vm0, %v1079_v62, 0.0 }
 0xfd5   :  { %1081 = vadd.xlane.f32.xlu1 %v1080_v63 }
0x1048   :  { %v1082_v8 = vpop.xlane.xlu1 %1081 }
0x1049   :  { %v1083_v9 = vmul.f32 %v1082_v8, %v1660_v22  ;;  %v603_v22 = vld [vmem:[%s2047_s2 + $0x14] ss:$0 sm:$0xff] }
0x104b   :  { %v1084_v10 = vadd.f32 1e-05, %v1083_v9 }
0x104d   :  { %1467 = vrsqrt.f32 %v1084_v10  ;;  %vm1091_vm10 = vweird.f32 %v1084_v10 }
0x1053   :  { %v1468_v11 = vpop.eup %1467 }
0x1054   :  { %v1086_v14 = vmul.f32 %v1468_v11, %v1084_v10  ;;  %vm1092_vm9 = vweird.f32 %v1468_v11 }
0x1055   :  { %vm1093_vm11 = vmor %vm1091_vm10, %vm1092_vm9 }
0x1056   :  { %v1087_v15 = vmul.f32 %v1468_v11, %v1086_v14 }
0x1058   :  { %v1088_v17 = vmul.f32 0.5, %v1087_v15 }
0x105a   :  { %v1089_v16 = vsub.f32 1.5, %v1088_v17 }
0x105c   :  { %v1090_v18 = vmul.f32 %v1468_v11, %v1089_v16 }
0x105e   :  { %v1094_v20 = vsel %vm1093_vm11, %v1468_v11, %v1090_v18 }
0x105f   :  { %v1095_v21 = vmul.f32 %v1094_v20, %v1078_v61 }
0x1061   :  { %v1096_v12 = vmul.f32 %v1095_v21, %v602_v19 }
0x1063   :  { %v1097_v23 = vadd.f32 %v1096_v12, %v603_v22 }
0x1065   :  { %1356 = vmatmul.msk.f32.vlgmr.msra.gmra.mxu1 %vm125_vm0, %v1097_v23 }
0x10e2   :  { %v1127_v13 = vpop.f32.mrf.mxu1 }
0x10e3   :  { %v1128_v25 = vadd.f32 %v1127_v13, %v1106_v24 }
0x10e5   :  { %1130 = vst [vmem:[#allocation2] sm:$0xff] %v1128_v25 }
0x10e6   :  { %1141 = dma.vmem_to_hbm [thread:$0]  %s1137_s20, 128, %s1139_s25, [#allocation3]  }
0x10e7   :  { %1493 = dma.done.wait [#allocation3], 128  }
0x10e8   :  { %1494 = vsyncadd [#allocation3], 4294967168 }
0x10e9   :  { %1146 = vsyncpa [#allocation3], 1 }

</bundles_post_ra>
